<compile_context>
chip_gen: v6e
topology: v6e:2x2x1
jax: 0.10.0
libtpu: 0.0.40
codegen_flags: <defaults>
</compile_context>

<pallas_src>
import functools

import jax
import jax.numpy as jnp
import numpy as np
from jax.experimental import pallas as pl
from jax.experimental.pallas import tpu as pltpu


def _round_up(x, m):
    return (x + m - 1) // m * m


# ----------------------------------------------------------------------------
# Kernel 1: 3-D "same" conv + fused per-block BN partial statistics.
# Grid: (N, D).  One (n, d) output slab of shape (H*W, Cp) per step.
# ----------------------------------------------------------------------------
def _make_conv3d_kernel(H, W, K, KCin, Cp):
    HW = H * W

    def kernel(xs_ref, w_ref, b_ref, y_ref, s_ref, q_ref):
        # xs_ref: (1, 1, Hp, Wp, K*Cin)  depth-stacked, spatially padded (bf16)
        # w_ref : (K, K, K*Cin, Cp)      conv weight (bf16, Cout zero-padded)
        # b_ref : (1, Cp)                conv bias (f32)
        # y_ref : (1, 1, H*W, Cp)        conv output (f32, lane-dense)
        # s_ref : (1, 1, 1, Cp)          per-block sum  (for BN mean)
        # q_ref : (1, 1, 1, Cp)          per-block sum of squares (for BN var)
        xb = xs_ref[0, 0]                                  # (Hp, Wp, K*Cin)
        acc = jnp.zeros((HW, Cp), jnp.float32)
        for kh in range(K):
            for kw in range(K):
                patch = xb[kh:kh + H, kw:kw + W, :].reshape(HW, KCin)
                acc = acc + jnp.dot(patch, w_ref[kh, kw],
                                    preferred_element_type=jnp.float32)
        yb = acc + b_ref[...]                              # (HW, Cp)
        y_ref[...] = yb.reshape(1, 1, HW, Cp)
        s_ref[...] = jnp.sum(yb, axis=0, keepdims=True).reshape(1, 1, 1, Cp)
        q_ref[...] = jnp.sum(yb * yb, axis=0, keepdims=True).reshape(1, 1, 1, Cp)

    return kernel


# ----------------------------------------------------------------------------
# Kernel 2: tiled BN-apply (precomputed scale/shift) + ReLU + 1x1x1 conv.
# Grid: (M // TM,), fully parallel over row tiles.
# ----------------------------------------------------------------------------
def _bn_relu_fc_kernel(y_ref, a_ref, s_ref, w_ref, b_ref, o_ref):
    # y_ref: (TM, Cp) f32   a_ref/s_ref/b_ref: (1, Cp) f32   w_ref: (Cp, Cp) bf16
    z = jnp.maximum(y_ref[...] * a_ref[...] + s_ref[...], 0.0)
    o_ref[...] = jnp.dot(z.astype(jnp.bfloat16), w_ref[...],
                         preferred_element_type=jnp.float32) + b_ref[...]


# ----------------------------------------------------------------------------
# Wrapper: layout prep (NCDHW <-> channels-last), padding, stats finalize.
# ----------------------------------------------------------------------------
@functools.partial(jax.jit, static_argnames=("kernel_size", "eps"))
def basic_block_3d(x_ncdhw, w1_pt, b1, gamma, beta, w2_pt, b2,
                   *, kernel_size, eps=1e-5):
    N, Cin, D, H, W = x_ncdhw.shape
    Cout = w1_pt.shape[0]
    K = kernel_size
    pad = K // 2
    Cp = _round_up(max(Cout, 128), 128)       # lane-dense channel padding
    KCin = K * Cin
    HW = H * W
    Hp, Wp = H + 2 * pad, W + 2 * pad

    # NCDHW -> NDHWC (bf16), spatial "same" padding, depth halo stack:
    # xs[n, d, hp, wp, kd*Cin + ci] = xpad[n, d + kd, hp, wp, ci]
    x = jnp.transpose(x_ncdhw, (0, 2, 3, 4, 1)).astype(jnp.bfloat16)
    xp = jnp.pad(x, ((0, 0), (pad, pad), (pad, pad), (pad, pad), (0, 0)))
    xs = jnp.concatenate([xp[:, kd:kd + D] for kd in range(K)], axis=-1)

    # conv weight (Cout, Cin, kd, kh, kw) -> (kh, kw, kd*Cin, Cp), bf16.
    w1 = jnp.transpose(w1_pt, (3, 4, 2, 1, 0)).reshape(K, K, KCin, Cout)
    w1 = jnp.pad(w1, ((0, 0), (0, 0), (0, 0), (0, Cp - Cout))).astype(jnp.bfloat16)
    b1p = jnp.pad(b1, (0, Cp - Cout)).reshape(1, Cp).astype(jnp.float32)

    conv_kernel = _make_conv3d_kernel(H, W, K, KCin, Cp)
    y, psum, psq = pl.pallas_call(
        conv_kernel,
        out_shape=(
            jax.ShapeDtypeStruct((N, D, HW, Cp), jnp.float32),
            jax.ShapeDtypeStruct((N, D, 1, Cp), jnp.float32),
            jax.ShapeDtypeStruct((N, D, 1, Cp), jnp.float32),
        ),
        grid=(N, D),
        in_specs=[
            pl.BlockSpec((1, 1, Hp, Wp, KCin), lambda n, d: (n, d, 0, 0, 0)),
            pl.BlockSpec((K, K, KCin, Cp), lambda n, d: (0, 0, 0, 0)),
            pl.BlockSpec((1, Cp), lambda n, d: (0, 0)),
        ],
        out_specs=(
            pl.BlockSpec((1, 1, HW, Cp), lambda n, d: (n, d, 0, 0)),
            pl.BlockSpec((1, 1, 1, Cp), lambda n, d: (n, d, 0, 0)),
            pl.BlockSpec((1, 1, 1, Cp), lambda n, d: (n, d, 0, 0)),
        ),
        compiler_params=pltpu.CompilerParams(
            dimension_semantics=("parallel", "parallel")),
    )(xs, w1, b1p)

    # Finalize training-mode batch statistics from the fused partial sums
    # (tiny (Cp,) vectors; conv output itself is never re-read for stats).
    cnt = float(N * D * H * W)
    mean = jnp.sum(psum, axis=(0, 1, 2)) / cnt
    var = jnp.maximum(jnp.sum(psq, axis=(0, 1, 2)) / cnt - mean * mean, 0.0)
    gamma_p = jnp.pad(gamma, (0, Cp - Cout))
    beta_p = jnp.pad(beta, (0, Cp - Cout))
    a_vec = gamma_p * jax.lax.rsqrt(var + eps)
    s_vec = beta_p - mean * a_vec
    a = a_vec.reshape(1, Cp).astype(jnp.float32)
    shift = s_vec.reshape(1, Cp).astype(jnp.float32)

    # 1x1x1 conv weight (Cout, Cout, 1, 1, 1) -> (Cp, Cp) matmul form, bf16.
    w2 = jnp.transpose(w2_pt.reshape(Cout, Cout), (1, 0))
    w2 = jnp.pad(w2, ((0, Cp - Cout), (0, Cp - Cout))).astype(jnp.bfloat16)
    b2p = jnp.pad(b2, (0, Cp - Cout)).reshape(1, Cp).astype(jnp.float32)

    # Tiled, parallel BN-apply + ReLU + 1x1x1 conv.
    M = N * D * HW
    TM = next((t for t in (512, 256, 128, 64, 32, 16, 8) if M % t == 0), M)
    y2 = y.reshape(M, Cp)
    out2 = pl.pallas_call(
        _bn_relu_fc_kernel,
        out_shape=jax.ShapeDtypeStruct((M, Cp), jnp.float32),
        grid=(M // TM,),
        in_specs=[
            pl.BlockSpec((TM, Cp), lambda i: (i, 0)),
            pl.BlockSpec((1, Cp), lambda i: (0, 0)),
            pl.BlockSpec((1, Cp), lambda i: (0, 0)),
            pl.BlockSpec((Cp, Cp), lambda i: (0, 0)),
            pl.BlockSpec((1, Cp), lambda i: (0, 0)),
        ],
        out_specs=pl.BlockSpec((TM, Cp), lambda i: (i, 0)),
        compiler_params=pltpu.CompilerParams(
            dimension_semantics=("parallel",)),
    )(y2, a, shift, w2, b2p)

    out = out2.reshape(N, D, H, W, Cp)[..., :Cout]
    return jnp.transpose(out, (0, 4, 1, 2, 3))      # NDHWC -> NCDHW


# ----------------------------------------------------------------------------
# Pure-JAX reference (NCDHW, mirrors the PyTorch module in training mode).
# ----------------------------------------------------------------------------
def _reference(x, w1_pt, b1, gamma, beta, w2_pt, b2, pad, eps):
    y = jax.lax.conv_general_dilated(
        x, w1_pt, window_strides=(1, 1, 1),
        padding=[(pad, pad)] * 3,
        dimension_numbers=("NCDHW", "OIDHW", "NCDHW"))
    y = y + b1.reshape(1, -1, 1, 1, 1)
    mean = jnp.mean(y, axis=(0, 2, 3, 4), keepdims=True)
    var = jnp.mean((y - mean) ** 2, axis=(0, 2, 3, 4), keepdims=True)
    y = (y - mean) * jax.lax.rsqrt(var + eps)
    y = y * gamma.reshape(1, -1, 1, 1, 1) + beta.reshape(1, -1, 1, 1, 1)
    y = jnp.maximum(y, 0.0)
    out = jax.lax.conv_general_dilated(
        y, w2_pt, window_strides=(1, 1, 1), padding="VALID",
        dimension_numbers=("NCDHW", "OIDHW", "NCDHW"))
    return out + b2.reshape(1, -1, 1, 1, 1)


if __name__ == "__main__":
    # Small, module-consistent shapes: bs=2, in_dims=4, out_dims=8,
    # spatial 8x8x8, kernel_size=3 (odd, as asserted by the module).
    N, Cin, Cout = 2, 4, 8
    D = H = W = 8
    K = 3
    eps = 1e-5

    key = jax.random.PRNGKey(0)
    k1, k2, k3, k4, kx = jax.random.split(key, 5)

    # Deterministic, PyTorch-default-like (kaiming-uniform) init.
    fan_in1 = Cin * K ** 3
    bound1 = 1.0 / float(np.sqrt(fan_in1))
    w1_pt = jax.random.uniform(k1, (Cout, Cin, K, K, K), jnp.float32,
                               -bound1, bound1)
    b1 = jax.random.uniform(k2, (Cout,), jnp.float32, -bound1, bound1)

    fan_in2 = Cout
    bound2 = 1.0 / float(np.sqrt(fan_in2))
    w2_pt = jax.random.uniform(k3, (Cout, Cout, 1, 1, 1), jnp.float32,
                               -bound2, bound2)
    b2 = jax.random.uniform(k4, (Cout,), jnp.float32, -bound2, bound2)

    gamma = jnp.ones((Cout,), jnp.float32)   # BatchNorm3d default affine init
    beta = jnp.zeros((Cout,), jnp.float32)
    # TODO(synk): BatchNorm3d running_mean/var buffer updates are not modeled
    # (they do not affect the forward output).

    x = jax.random.normal(kx, (N, Cin, D, H, W), jnp.float32)

    out = basic_block_3d(x, w1_pt, b1, gamma, beta, w2_pt, b2,
                         kernel_size=K, eps=eps)
    out = jax.block_until_ready(out)

    ref = jax.block_until_ready(
        _reference(x, w1_pt, b1, gamma, beta, w2_pt, b2, K // 2, eps))

    np.testing.assert_allclose(np.asarray(out), np.asarray(ref),
                               atol=5e-2, rtol=5e-2)
    print("KERNEL_OK")
</pallas_src>

<mosaic_0001>
module attributes {stable_mosaic.version = 11 : i64} {
  func.func @kernel(%arg0: i32, %arg1: i32, %arg2: memref<1x1x10x10x12xbf16, #tpu.memory_space<vmem>>, %arg3: memref<3x3x12x128xbf16, #tpu.memory_space<vmem>>, %arg4: memref<1x128xf32, #tpu.memory_space<vmem>>, %arg5: memref<1x1x64x128xf32, #tpu.memory_space<vmem>>, %arg6: memref<1x1x1x128xf32, #tpu.memory_space<vmem>>, %arg7: memref<1x1x1x128xf32, #tpu.memory_space<vmem>>) attributes {dimension_semantics = [#tpu.dimension_semantics<parallel>, #tpu.dimension_semantics<parallel>], iteration_bounds = array<i64: 2, 8>, scalar_prefetch = 0 : i64, scratch_operands = 0 : i64, tpu.core_type = #tpu.core_type<tc>, window_params = [{transform_indices = @transform_0, window_bounds = array<i64: 1, 1, 10, 10, 12>}, {pipeline_mode = #tpu.pipeline_mode<synchronous>, transform_indices = @transform_1, window_bounds = array<i64: 3, 3, 12, 128>}, {pipeline_mode = #tpu.pipeline_mode<synchronous>, transform_indices = @transform_2, window_bounds = array<i64: 1, 128>}, {transform_indices = @transform_3, window_bounds = array<i64: 1, 1, 64, 128>}, {transform_indices = @transform_4, window_bounds = array<i64: 1, 1, 1, 128>}, {transform_indices = @transform_5, window_bounds = array<i64: 1, 1, 1, 128>}]} {
    %c0 = arith.constant 0 : index
    %c0_0 = arith.constant 0 : index
    %c0_1 = arith.constant 0 : index
    %c0_2 = arith.constant 0 : index
    %c0_3 = arith.constant 0 : index
    %0 = vector.load %arg2[%c0, %c0_0, %c0_1, %c0_2, %c0_3] : memref<1x1x10x10x12xbf16, #tpu.memory_space<vmem>>, vector<1x1x10x10x12xbf16>
    %1 = vector.shape_cast %0 : vector<1x1x10x10x12xbf16> to vector<10x10x12xbf16>
    %cst = arith.constant 0.000000e+00 : f32
    %2 = vector.broadcast %cst : f32 to vector<64x128xf32>
    %3 = vector.extract_strided_slice %1 {offsets = [0, 0, 0], sizes = [8, 8, 12], strides = [1, 1, 1]} : vector<10x10x12xbf16> to vector<8x8x12xbf16>
    %4 = vector.shape_cast %3 : vector<8x8x12xbf16> to vector<64x12xbf16>
    %c0_4 = arith.constant 0 : index
    %c0_5 = arith.constant 0 : index
    %c0_6 = arith.constant 0 : index
    %c0_7 = arith.constant 0 : index
    %5 = vector.load %arg3[%c0_4, %c0_5, %c0_6, %c0_7] : memref<3x3x12x128xbf16, #tpu.memory_space<vmem>>, vector<1x1x12x128xbf16>
    %6 = vector.shape_cast %5 : vector<1x1x12x128xbf16> to vector<12x128xbf16>
    %cst_8 = arith.constant dense<0.000000e+00> : vector<64x128xf32>
    %7 = tpu.matmul %4, %6, %cst_8 {dimension_numbers = #tpu.dot_dimension_numbers<[1], [0], [0], [1], [0, 0, 1, 1], [], []>} : vector<64x12xbf16>, vector<12x128xbf16>, vector<64x128xf32> -> vector<64x128xf32>
    %8 = arith.addf %2, %7 : vector<64x128xf32>
    %9 = vector.extract_strided_slice %1 {offsets = [0, 1, 0], sizes = [8, 8, 12], strides = [1, 1, 1]} : vector<10x10x12xbf16> to vector<8x8x12xbf16>
    %10 = vector.shape_cast %9 : vector<8x8x12xbf16> to vector<64x12xbf16>
    %c0_9 = arith.constant 0 : index
    %c1 = arith.constant 1 : index
    %c0_10 = arith.constant 0 : index
    %c0_11 = arith.constant 0 : index
    %11 = vector.load %arg3[%c0_9, %c1, %c0_10, %c0_11] : memref<3x3x12x128xbf16, #tpu.memory_space<vmem>>, vector<1x1x12x128xbf16>
    %12 = vector.shape_cast %11 : vector<1x1x12x128xbf16> to vector<12x128xbf16>
    %cst_12 = arith.constant dense<0.000000e+00> : vector<64x128xf32>
    %13 = tpu.matmul %10, %12, %cst_12 {dimension_numbers = #tpu.dot_dimension_numbers<[1], [0], [0], [1], [0, 0, 1, 1], [], []>} : vector<64x12xbf16>, vector<12x128xbf16>, vector<64x128xf32> -> vector<64x128xf32>
    %14 = arith.addf %8, %13 : vector<64x128xf32>
    %15 = vector.extract_strided_slice %1 {offsets = [0, 2, 0], sizes = [8, 8, 12], strides = [1, 1, 1]} : vector<10x10x12xbf16> to vector<8x8x12xbf16>
    %16 = vector.shape_cast %15 : vector<8x8x12xbf16> to vector<64x12xbf16>
    %c0_13 = arith.constant 0 : index
    %c2 = arith.constant 2 : index
    %c0_14 = arith.constant 0 : index
    %c0_15 = arith.constant 0 : index
    %17 = vector.load %arg3[%c0_13, %c2, %c0_14, %c0_15] : memref<3x3x12x128xbf16, #tpu.memory_space<vmem>>, vector<1x1x12x128xbf16>
    %18 = vector.shape_cast %17 : vector<1x1x12x128xbf16> to vector<12x128xbf16>
    %cst_16 = arith.constant dense<0.000000e+00> : vector<64x128xf32>
    %19 = tpu.matmul %16, %18, %cst_16 {dimension_numbers = #tpu.dot_dimension_numbers<[1], [0], [0], [1], [0, 0, 1, 1], [], []>} : vector<64x12xbf16>, vector<12x128xbf16>, vector<64x128xf32> -> vector<64x128xf32>
    %20 = arith.addf %14, %19 : vector<64x128xf32>
    %21 = vector.extract_strided_slice %1 {offsets = [1, 0, 0], sizes = [8, 8, 12], strides = [1, 1, 1]} : vector<10x10x12xbf16> to vector<8x8x12xbf16>
    %22 = vector.shape_cast %21 : vector<8x8x12xbf16> to vector<64x12xbf16>
    %c1_17 = arith.constant 1 : index
    %c0_18 = arith.constant 0 : index
    %c0_19 = arith.constant 0 : index
    %c0_20 = arith.constant 0 : index
    %23 = vector.load %arg3[%c1_17, %c0_18, %c0_19, %c0_20] : memref<3x3x12x128xbf16, #tpu.memory_space<vmem>>, vector<1x1x12x128xbf16>
    %24 = vector.shape_cast %23 : vector<1x1x12x128xbf16> to vector<12x128xbf16>
    %cst_21 = arith.constant dense<0.000000e+00> : vector<64x128xf32>
    %25 = tpu.matmul %22, %24, %cst_21 {dimension_numbers = #tpu.dot_dimension_numbers<[1], [0], [0], [1], [0, 0, 1, 1], [], []>} : vector<64x12xbf16>, vector<12x128xbf16>, vector<64x128xf32> -> vector<64x128xf32>
    %26 = arith.addf %20, %25 : vector<64x128xf32>
    %27 = vector.extract_strided_slice %1 {offsets = [1, 1, 0], sizes = [8, 8, 12], strides = [1, 1, 1]} : vector<10x10x12xbf16> to vector<8x8x12xbf16>
    %28 = vector.shape_cast %27 : vector<8x8x12xbf16> to vector<64x12xbf16>
    %c1_22 = arith.constant 1 : index
    %c1_23 = arith.constant 1 : index
    %c0_24 = arith.constant 0 : index
    %c0_25 = arith.constant 0 : index
    %29 = vector.load %arg3[%c1_22, %c1_23, %c0_24, %c0_25] : memref<3x3x12x128xbf16, #tpu.memory_space<vmem>>, vector<1x1x12x128xbf16>
    %30 = vector.shape_cast %29 : vector<1x1x12x128xbf16> to vector<12x128xbf16>
    %cst_26 = arith.constant dense<0.000000e+00> : vector<64x128xf32>
    %31 = tpu.matmul %28, %30, %cst_26 {dimension_numbers = #tpu.dot_dimension_numbers<[1], [0], [0], [1], [0, 0, 1, 1], [], []>} : vector<64x12xbf16>, vector<12x128xbf16>, vector<64x128xf32> -> vector<64x128xf32>
    %32 = arith.addf %26, %31 : vector<64x128xf32>
    %33 = vector.extract_strided_slice %1 {offsets = [1, 2, 0], sizes = [8, 8, 12], strides = [1, 1, 1]} : vector<10x10x12xbf16> to vector<8x8x12xbf16>
    %34 = vector.shape_cast %33 : vector<8x8x12xbf16> to vector<64x12xbf16>
    %c1_27 = arith.constant 1 : index
    %c2_28 = arith.constant 2 : index
    %c0_29 = arith.constant 0 : index
    %c0_30 = arith.constant 0 : index
    %35 = vector.load %arg3[%c1_27, %c2_28, %c0_29, %c0_30] : memref<3x3x12x128xbf16, #tpu.memory_space<vmem>>, vector<1x1x12x128xbf16>
    %36 = vector.shape_cast %35 : vector<1x1x12x128xbf16> to vector<12x128xbf16>
    %cst_31 = arith.constant dense<0.000000e+00> : vector<64x128xf32>
    %37 = tpu.matmul %34, %36, %cst_31 {dimension_numbers = #tpu.dot_dimension_numbers<[1], [0], [0], [1], [0, 0, 1, 1], [], []>} : vector<64x12xbf16>, vector<12x128xbf16>, vector<64x128xf32> -> vector<64x128xf32>
    %38 = arith.addf %32, %37 : vector<64x128xf32>
    %39 = vector.extract_strided_slice %1 {offsets = [2, 0, 0], sizes = [8, 8, 12], strides = [1, 1, 1]} : vector<10x10x12xbf16> to vector<8x8x12xbf16>
    %40 = vector.shape_cast %39 : vector<8x8x12xbf16> to vector<64x12xbf16>
    %c2_32 = arith.constant 2 : index
    %c0_33 = arith.constant 0 : index
    %c0_34 = arith.constant 0 : index
    %c0_35 = arith.constant 0 : index
    %41 = vector.load %arg3[%c2_32, %c0_33, %c0_34, %c0_35] : memref<3x3x12x128xbf16, #tpu.memory_space<vmem>>, vector<1x1x12x128xbf16>
    %42 = vector.shape_cast %41 : vector<1x1x12x128xbf16> to vector<12x128xbf16>
    %cst_36 = arith.constant dense<0.000000e+00> : vector<64x128xf32>
    %43 = tpu.matmul %40, %42, %cst_36 {dimension_numbers = #tpu.dot_dimension_numbers<[1], [0], [0], [1], [0, 0, 1, 1], [], []>} : vector<64x12xbf16>, vector<12x128xbf16>, vector<64x128xf32> -> vector<64x128xf32>
    %44 = arith.addf %38, %43 : vector<64x128xf32>
    %45 = vector.extract_strided_slice %1 {offsets = [2, 1, 0], sizes = [8, 8, 12], strides = [1, 1, 1]} : vector<10x10x12xbf16> to vector<8x8x12xbf16>
    %46 = vector.shape_cast %45 : vector<8x8x12xbf16> to vector<64x12xbf16>
    %c2_37 = arith.constant 2 : index
    %c1_38 = arith.constant 1 : index
    %c0_39 = arith.constant 0 : index
    %c0_40 = arith.constant 0 : index
    %47 = vector.load %arg3[%c2_37, %c1_38, %c0_39, %c0_40] : memref<3x3x12x128xbf16, #tpu.memory_space<vmem>>, vector<1x1x12x128xbf16>
    %48 = vector.shape_cast %47 : vector<1x1x12x128xbf16> to vector<12x128xbf16>
    %cst_41 = arith.constant dense<0.000000e+00> : vector<64x128xf32>
    %49 = tpu.matmul %46, %48, %cst_41 {dimension_numbers = #tpu.dot_dimension_numbers<[1], [0], [0], [1], [0, 0, 1, 1], [], []>} : vector<64x12xbf16>, vector<12x128xbf16>, vector<64x128xf32> -> vector<64x128xf32>
    %50 = arith.addf %44, %49 : vector<64x128xf32>
    %51 = vector.extract_strided_slice %1 {offsets = [2, 2, 0], sizes = [8, 8, 12], strides = [1, 1, 1]} : vector<10x10x12xbf16> to vector<8x8x12xbf16>
    %52 = vector.shape_cast %51 : vector<8x8x12xbf16> to vector<64x12xbf16>
    %c2_42 = arith.constant 2 : index
    %c2_43 = arith.constant 2 : index
    %c0_44 = arith.constant 0 : index
    %c0_45 = arith.constant 0 : index
    %53 = vector.load %arg3[%c2_42, %c2_43, %c0_44, %c0_45] : memref<3x3x12x128xbf16, #tpu.memory_space<vmem>>, vector<1x1x12x128xbf16>
    %54 = vector.shape_cast %53 : vector<1x1x12x128xbf16> to vector<12x128xbf16>
    %cst_46 = arith.constant dense<0.000000e+00> : vector<64x128xf32>
    %55 = tpu.matmul %52, %54, %cst_46 {dimension_numbers = #tpu.dot_dimension_numbers<[1], [0], [0], [1], [0, 0, 1, 1], [], []>} : vector<64x12xbf16>, vector<12x128xbf16>, vector<64x128xf32> -> vector<64x128xf32>
    %56 = arith.addf %50, %55 : vector<64x128xf32>
    %c0_47 = arith.constant 0 : index
    %c0_48 = arith.constant 0 : index
    %57 = vector.load %arg4[%c0_47, %c0_48] : memref<1x128xf32, #tpu.memory_space<vmem>>, vector<1x128xf32>
    %58 = vector.broadcast %57 : vector<1x128xf32> to vector<64x128xf32>
    %59 = arith.addf %56, %58 : vector<64x128xf32>
    %60 = vector.shape_cast %59 : vector<64x128xf32> to vector<1x1x64x128xf32>
    %c0_49 = arith.constant 0 : index
    %c0_50 = arith.constant 0 : index
    %c0_51 = arith.constant 0 : index
    %c0_52 = arith.constant 0 : index
    %61 = vector.load %arg5[%c0_49, %c0_50, %c0_51, %c0_52] : memref<1x1x64x128xf32, #tpu.memory_space<vmem>>, vector<1x1x64x128xf32>
    tpu.vector_store %arg5[%c0_49, %c0_50, %c0_51, %c0_52], %60 {strides = array<i32>} : memref<1x1x64x128xf32, #tpu.memory_space<vmem>>, vector<1x1x64x128xf32>,
    %cst_53 = arith.constant dense<0.000000e+00> : vector<128xf32>
    %62 = vector.multi_reduction <add>, %59, %cst_53 [0] : vector<64x128xf32> to vector<128xf32>
    %63 = vector.shape_cast %62 : vector<128xf32> to vector<1x128xf32>
    %64 = vector.shape_cast %63 : vector<1x128xf32> to vector<1x1x1x128xf32>
    %c0_54 = arith.constant 0 : index
    %c0_55 = arith.constant 0 : index
    %c0_56 = arith.constant 0 : index
    %c0_57 = arith.constant 0 : index
    %65 = vector.load %arg6[%c0_54, %c0_55, %c0_56, %c0_57] : memref<1x1x1x128xf32, #tpu.memory_space<vmem>>, vector<1x1x1x128xf32>
    tpu.vector_store %arg6[%c0_54, %c0_55, %c0_56, %c0_57], %64 {strides = array<i32>} : memref<1x1x1x128xf32, #tpu.memory_space<vmem>>, vector<1x1x1x128xf32>,
    %66 = arith.mulf %59, %59 : vector<64x128xf32>
    %cst_58 = arith.constant dense<0.000000e+00> : vector<128xf32>
    %67 = vector.multi_reduction <add>, %66, %cst_58 [0] : vector<64x128xf32> to vector<128xf32>
    %68 = vector.shape_cast %67 : vector<128xf32> to vector<1x128xf32>
    %69 = vector.shape_cast %68 : vector<1x128xf32> to vector<1x1x1x128xf32>
    %c0_59 = arith.constant 0 : index
    %c0_60 = arith.constant 0 : index
    %c0_61 = arith.constant 0 : index
    %c0_62 = arith.constant 0 : index
    %70 = vector.load %arg7[%c0_59, %c0_60, %c0_61, %c0_62] : memref<1x1x1x128xf32, #tpu.memory_space<vmem>>, vector<1x1x1x128xf32>
    tpu.vector_store %arg7[%c0_59, %c0_60, %c0_61, %c0_62], %69 {strides = array<i32>} : memref<1x1x1x128xf32, #tpu.memory_space<vmem>>, vector<1x1x1x128xf32>,
    return
  }
  func.func @transform_0(%arg0: i32, %arg1: i32) -> (i32, i32, i32, i32, i32) {
    %c0_i32 = arith.constant 0 : i32
    %c0_i32_0 = arith.constant 0 : i32
    %c0_i32_1 = arith.constant 0 : i32
    %c0_i32_2 = arith.constant 0 : i32
    return %arg0, %arg1, %c0_i32, %c0_i32_0, %c0_i32_1 : i32, i32, i32, i32, i32
  }
  func.func @transform_1(%arg0: i32, %arg1: i32) -> (i32, i32, i32, i32) {
    %c0_i32 = arith.constant 0 : i32
    %c0_i32_0 = arith.constant 0 : i32
    %c0_i32_1 = arith.constant 0 : i32
    %c0_i32_2 = arith.constant 0 : i32
    %c0_i32_3 = arith.constant 0 : i32
    return %c0_i32, %c0_i32_0, %c0_i32_1, %c0_i32_2 : i32, i32, i32, i32
  }
  func.func @transform_2(%arg0: i32, %arg1: i32) -> (i32, i32) {
    %c0_i32 = arith.constant 0 : i32
    %c0_i32_0 = arith.constant 0 : i32
    %c0_i32_1 = arith.constant 0 : i32
    return %c0_i32, %c0_i32_0 : i32, i32
  }
  func.func @transform_3(%arg0: i32, %arg1: i32) -> (i32, i32, i32, i32) {
    %c0_i32 = arith.constant 0 : i32
    %c0_i32_0 = arith.constant 0 : i32
    %c0_i32_1 = arith.constant 0 : i32
    return %arg0, %arg1, %c0_i32, %c0_i32_0 : i32, i32, i32, i32
  }
  func.func @transform_4(%arg0: i32, %arg1: i32) -> (i32, i32, i32, i32) {
    %c0_i32 = arith.constant 0 : i32
    %c0_i32_0 = arith.constant 0 : i32
    %c0_i32_1 = arith.constant 0 : i32
    return %arg0, %arg1, %c0_i32, %c0_i32_0 : i32, i32, i32, i32
  }
  func.func @transform_5(%arg0: i32, %arg1: i32) -> (i32, i32, i32, i32) {
    %c0_i32 = arith.constant 0 : i32
    %c0_i32_0 = arith.constant 0 : i32
    %c0_i32_1 = arith.constant 0 : i32
    return %arg0, %arg1, %c0_i32, %c0_i32_0 : i32, i32, i32, i32
  }
}

module attributes {stable_mosaic.version = 11 : i64} {
  func.func @_bn_relu_fc_kernel(%arg0: i32, %arg1: memref<512x128xf32, #tpu.memory_space<vmem>>, %arg2: memref<1x128xf32, #tpu.memory_space<vmem>>, %arg3: memref<1x128xf32, #tpu.memory_space<vmem>>, %arg4: memref<128x128xbf16, #tpu.memory_space<vmem>>, %arg5: memref<1x128xf32, #tpu.memory_space<vmem>>, %arg6: memref<512x128xf32, #tpu.memory_space<vmem>>) attributes {dimension_semantics = [#tpu.dimension_semantics<parallel>], iteration_bounds = array<i64: 2>, scalar_prefetch = 0 : i64, scratch_operands = 0 : i64, tpu.core_type = #tpu.core_type<tc>, window_params = [{transform_indices = @transform_0, window_bounds = array<i64: 512, 128>}, {pipeline_mode = #tpu.pipeline_mode<synchronous>, transform_indices = @transform_1, window_bounds = array<i64: 1, 128>}, {pipeline_mode = #tpu.pipeline_mode<synchronous>, transform_indices = @transform_2, window_bounds = array<i64: 1, 128>}, {pipeline_mode = #tpu.pipeline_mode<synchronous>, transform_indices = @transform_3, window_bounds = array<i64: 128, 128>}, {pipeline_mode = #tpu.pipeline_mode<synchronous>, transform_indices = @transform_4, window_bounds = array<i64: 1, 128>}, {transform_indices = @transform_5, window_bounds = array<i64: 512, 128>}]} {
    %c0 = arith.constant 0 : index
    %c0_0 = arith.constant 0 : index
    %0 = vector.load %arg1[%c0, %c0_0] : memref<512x128xf32, #tpu.memory_space<vmem>>, vector<512x128xf32>
    %c0_1 = arith.constant 0 : index
    %c0_2 = arith.constant 0 : index
    %1 = vector.load %arg2[%c0_1, %c0_2] : memref<1x128xf32, #tpu.memory_space<vmem>>, vector<1x128xf32>
    %2 = vector.broadcast %1 : vector<1x128xf32> to vector<512x128xf32>
    %3 = arith.mulf %0, %2 : vector<512x128xf32>
    %c0_3 = arith.constant 0 : index
    %c0_4 = arith.constant 0 : index
    %4 = vector.load %arg3[%c0_3, %c0_4] : memref<1x128xf32, #tpu.memory_space<vmem>>, vector<1x128xf32>
    %5 = vector.broadcast %4 : vector<1x128xf32> to vector<512x128xf32>
    %6 = arith.addf %3, %5 : vector<512x128xf32>
    %cst = arith.constant 0.000000e+00 : f32
    %7 = vector.broadcast %cst : f32 to vector<512x128xf32>
    %8 = arith.maximumf %6, %7 : vector<512x128xf32>
    %9 = arith.truncf %8 : vector<512x128xf32> to vector<512x128xbf16>
    %c0_5 = arith.constant 0 : index
    %c0_6 = arith.constant 0 : index
    %10 = vector.load %arg4[%c0_5, %c0_6] : memref<128x128xbf16, #tpu.memory_space<vmem>>, vector<128x128xbf16>
    %cst_7 = arith.constant dense<0.000000e+00> : vector<512x128xf32>
    %11 = tpu.matmul %9, %10, %cst_7 {dimension_numbers = #tpu.dot_dimension_numbers<[1], [0], [0], [1], [0, 0, 1, 1], [], []>} : vector<512x128xbf16>, vector<128x128xbf16>, vector<512x128xf32> -> vector<512x128xf32>
    %c0_8 = arith.constant 0 : index
    %c0_9 = arith.constant 0 : index
    %12 = vector.load %arg5[%c0_8, %c0_9] : memref<1x128xf32, #tpu.memory_space<vmem>>, vector<1x128xf32>
    %13 = vector.broadcast %12 : vector<1x128xf32> to vector<512x128xf32>
    %14 = arith.addf %11, %13 : vector<512x128xf32>
    %c0_10 = arith.constant 0 : index
    %c0_11 = arith.constant 0 : index
    %15 = vector.load %arg6[%c0_10, %c0_11] : memref<512x128xf32, #tpu.memory_space<vmem>>, vector<512x128xf32>
    tpu.vector_store %arg6[%c0_10, %c0_11], %14 {strides = array<i32>} : memref<512x128xf32, #tpu.memory_space<vmem>>, vector<512x128xf32>,
    return
  }
  func.func @transform_0(%arg0: i32) -> (i32, i32) {
    %c0_i32 = arith.constant 0 : i32
    %c0_i32_0 = arith.constant 0 : i32
    return %arg0, %c0_i32 : i32, i32
  }
  func.func @transform_1(%arg0: i32) -> (i32, i32) {
    %c0_i32 = arith.constant 0 : i32
    %c0_i32_0 = arith.constant 0 : i32
    %c0_i32_1 = arith.constant 0 : i32
    return %c0_i32, %c0_i32_0 : i32, i32
  }
  func.func @transform_2(%arg0: i32) -> (i32, i32) {
    %c0_i32 = arith.constant 0 : i32
    %c0_i32_0 = arith.constant 0 : i32
    %c0_i32_1 = arith.constant 0 : i32
    return %c0_i32, %c0_i32_0 : i32, i32
  }
  func.func @transform_3(%arg0: i32) -> (i32, i32) {
    %c0_i32 = arith.constant 0 : i32
    %c0_i32_0 = arith.constant 0 : i32
    %c0_i32_1 = arith.constant 0 : i32
    return %c0_i32, %c0_i32_0 : i32, i32
  }
  func.func @transform_4(%arg0: i32) -> (i32, i32) {
    %c0_i32 = arith.constant 0 : i32
    %c0_i32_0 = arith.constant 0 : i32
    %c0_i32_1 = arith.constant 0 : i32
    return %c0_i32, %c0_i32_0 : i32, i32
  }
  func.func @transform_5(%arg0: i32) -> (i32, i32) {
    %c0_i32 = arith.constant 0 : i32
    %c0_i32_0 = arith.constant 0 : i32
    return %arg0, %c0_i32 : i32, i32
  }
}

</mosaic_0001>

<bundles_post_ra>
// kernel: basic_block_3d.3
= control target key start
LH: loop header
LB: loop body
LE: loop exit
PB: predicated region body
PF: predicated region fallthrough
CT: control target
= control target key end

     0   :  { %s1223_s18 = smov 0   ;;  %s1651_s0 = inlined_call_operand.vmem [shape: f32[1024,128], index: 0, kind: input, shape index: {}]   ;;  %s1652_s1 = inlined_call_operand.vmem [shape: f32[1,128], index: 1, kind: input, shape index: {}]   ;;  %s1653_s2 = inlined_call_operand.vmem [shape: f32[1,128], index: 2, kind: input, shape index: {}]   ;;  %s1654_s3 = inlined_call_operand.vmem [shape: bf16[128,128], index: 3, kind: input, shape index: {}]   ;;  %s1655_s4 = inlined_call_operand.vmem [shape: f32[1,128], index: 4, kind: input, shape index: {}]   ;;  %s1656_s5 = inlined_call_operand.vmem [shape: f32[1024,128], index: 5, kind: output, shape index: {}]  }
   0x1 LB: > { %s1011_s19 = sadd.s32 4294967295, %s1191_s18   ;;  %p1015_p0 = scmp.ge.s32.totalorder %s1191_s18, 1  ;;  %s1191_s18 = sphi %s1223_s18, %s15_s18  }
   0x2   : > { %p188_p1 = scmp.lt.s32.totalorder %s1191_s18, 3 }
   0x4   : > { %p189_p2 = pnand %p1015_p0, %p188_p1 }
   0x5   : > { %s1016_s22 = sshll.u32 (!%p189_p2), %s1011_s19, 6 }
   0x6   : > { %192 = sbr.rel (%p189_p2) target bundleno = 302 (0x12e), region = 40  ;;  %p217_p3 = scmp.lt.s32.totalorder (!%p189_p2), %s1016_s22, 127 }
   0xb   : > { %v1177_v0 = vld [vmem:[%s1654_s3 + $0x38] sm:$0xff]   ;;  %v1178_v1 = vld [vmem:[%s1654_s3 + $0x30] sm:$0xff]   ;;  %s1658_s22 = smov (!%p217_p3, %s1016_s22), 127  ;;  %v1179_v2 = vld [vmem:[%s1654_s3 + $0x28] sm:$0xff]  }
   0xc   : > { %1073 = vmatprep.subr.bf16.mxu0 %v1177_v0  ;;  %1153 = vmatprep.subr.bf16.mxu1 %v1177_v0  ;;  %s1017_s27 = sshll.u32 %s1658_s22, 3  ;;  %v1180_v3 = vld [vmem:[%s1654_s3 + $0x20] sm:$0xff]   ;;  %v1181_v21 = vld [vmem:[%s1654_s3 + $0x18] sm:$0xff]   ;;  %v1182_v39 = vld [vmem:[%s1654_s3 + $0x10] sm:$0xff]  }
   0xd   : > { %1074 = vmatpush3.bf16.msra.mxu0 %v1177_v0  ;;  %1161 = vmatpush3.bf16.msra.mxu1 %v1177_v0  ;;  %s1248_s30 = scalar_lea.vmem %s1651_s0, %s1017_s27  ;;  %v1258_v6 = vld [vmem:[%s1652_s1] ss:$0 sm:$0xff]  ;;  %v1183_v56 = vld [vmem:[%s1654_s3 + $0x8] sm:$0xff]   ;;  %s1518_s26 = scalar_lea.vmem %s1656_s5, %s1017_s27 }
   0xe   : > { %1075 = vmatprep.subr.bf16.mxu0 %v1178_v1  ;;  %1154 = vmatprep.subr.bf16.mxu1 %v1178_v1  ;;  %v229_v4 = vld [vmem:[%s1248_s30] sm:$0xff]  ;;  %v230_v5 = vld [vmem:[%s1248_s30 + $0x8] sm:$0xff]  ;;  %v231_v14 = vld [vmem:[%s1248_s30 + $0x10] sm:$0xff] }
   0xf   : > { %v300_v7 = vmul.f32 %v1258_v6, %v229_v4  ;;  %v301_v8 = vmul.f32 %v1258_v6, %v230_v5  ;;  %v1265_v9 = vld [vmem:[%s1653_s2] ss:$0 sm:$0xff]  ;;  %v262_v11 = vld [vmem:[%s1248_s30 + $0x108] sm:$0xff]  ;;  %v232_v15 = vld [vmem:[%s1248_s30 + $0x18] sm:$0xff]  ;;  %v302_v19 = vmul.f32 %v1258_v6, %v231_v14 }
  0x10   : > { %v261_v10 = vld [vmem:[%s1248_s30 + $0x100] sm:$0xff]  ;;  %v333_v13 = vmul.f32 %v1258_v6, %v262_v11  ;;  %v263_v16 = vld [vmem:[%s1248_s30 + $0x110] sm:$0xff]  ;;  %v264_v20 = vld [vmem:[%s1248_s30 + $0x118] sm:$0xff]  ;;  %v303_v24 = vmul.f32 %v1258_v6, %v232_v15 }
  0x11   : > { %1076 = vmatpush3.bf16.msra.mxu0 %v1178_v1  ;;  %1162 = vmatpush3.bf16.msra.mxu1 %v1178_v1  ;;  %v332_v12 = vmul.f32 %v1258_v6, %v261_v10  ;;  %v371_v17 = vadd.f32 %v1265_v9, %v300_v7  ;;  %v372_v18 = vadd.f32 %v1265_v9, %v301_v8  ;;  %v233_v25 = vld [vmem:[%s1248_s30 + $0x20] sm:$0xff]  ;;  %v234_v29 = vld [vmem:[%s1248_s30 + $0x28] sm:$0xff]  ;;  %v235_v38 = vld [vmem:[%s1248_s30 + $0x30] sm:$0xff] }
  0x12   : > { %1077 = vmatprep.subr.bf16.mxu0 %v1179_v2  ;;  %1155 = vmatprep.subr.bf16.mxu1 %v1179_v2  ;;  %v404_v23 = vadd.f32 %v1265_v9, %v333_v13  ;;  %v334_v28 = vmul.f32 %v1258_v6, %v263_v16  ;;  %v335_v32 = vmul.f32 %v1258_v6, %v264_v20  ;;  %v265_v33 = vld [vmem:[%s1248_s30 + $0x120] sm:$0xff]  ;;  %v266_v34 = vld [vmem:[%s1248_s30 + $0x128] sm:$0xff]  ;;  %v236_v43 = vld [vmem:[%s1248_s30 + $0x38] sm:$0xff] }
  0x13   : > { %v403_v22 = vadd.f32 %v1265_v9, %v332_v12  ;;  %v435_v26 = vmax.f32 %v371_v17, 0.0  ;;  %v436_v27 = vmax.f32 %v372_v18, 0.0  ;;  %v373_v36 = vadd.f32 %v1265_v9, %v302_v19  ;;  %v267_v47 = vld [vmem:[%s1248_s30 + $0x130] sm:$0xff]  ;;  %v268_v52 = vld [vmem:[%s1248_s30 + $0x138] sm:$0xff]  ;;  %v237_v61 = vld [vmem:[%s1248_s30 + $0x40] sm:$0xff] }
  0x14   : > { %v468_v31 = vmax.f32 %v404_v23, 0.0  ;;  %v304_v37 = vmul.f32 %v1258_v6, %v233_v25  ;;  %v374_v41 = vadd.f32 %v1265_v9, %v303_v24  ;;  %v305_v42 = vmul.f32 %v1258_v6, %v234_v29  ;;  %v238_v1 = vld [vmem:[%s1248_s30 + $0x48] sm:$0xff]  ;;  %v269_v7 = vld [vmem:[%s1248_s30 + $0x140] sm:$0xff]  ;;  %v239_v14 = vld [vmem:[%s1248_s30 + $0x50] sm:$0xff] }
  0x15   : > { %1078 = vmatpush3.bf16.msra.mxu0 %v1179_v2  ;;  %1163 = vmatpush3.bf16.msra.mxu1 %v1179_v2  ;;  %v467_v30 = vmax.f32 %v403_v22, 0.0  ;;  %v499_v35 = vpack.c.bf16 %v436_v27, %v435_v26  ;;  %v405_v44 = vadd.f32 %v1265_v9, %v334_v28  ;;  %v336_v45 = vmul.f32 %v1258_v6, %v265_v33  ;;  %v270_v8 = vld [vmem:[%s1248_s30 + $0x148] sm:$0xff]  ;;  %v240_v15 = vld [vmem:[%s1248_s30 + $0x58] sm:$0xff]  ;;  %v1184_v16 = vld [vmem:[%s1654_s3] sm:$0xff]  }
  0x16   : > { %1079 = vmatprep.subr.bf16.mxu0 %v1180_v3  ;;  %1156 = vmatprep.subr.bf16.mxu1 %v1180_v3  ;;  %v337_v46 = vmul.f32 %v1258_v6, %v266_v34  ;;  %v406_v48 = vadd.f32 %v1265_v9, %v335_v32  ;;  %v375_v49 = vadd.f32 %v1265_v9, %v304_v37  ;;  %v437_v57 = vmax.f32 %v373_v36, 0.0  ;;  %v272_v26 = vld [vmem:[%s1248_s30 + $0x158] sm:$0xff] }
  0x17   : > { %v515_v40 = vpack.c.bf16 %v468_v31, %v467_v30  ;;  %1089 = vmatprep.mubr.bf16.mxu0 %v499_v35  ;;  %v376_v50 = vadd.f32 %v1265_v9, %v305_v42  ;;  %v306_v51 = vmul.f32 %v1258_v6, %v235_v38  ;;  %v407_v53 = vadd.f32 %v1265_v9, %v336_v45  ;;  %v241_v31 = vld [vmem:[%s1248_s30 + $0x60] sm:$0xff]  ;;  %v242_v35 = vld [vmem:[%s1248_s30 + $0x68] sm:$0xff]  ;;  %v243_v45 = vld [vmem:[%s1248_s30 + $0x70] sm:$0xff] }
  0x18   : > { %v408_v54 = vadd.f32 %v1265_v9, %v337_v46  ;;  %v307_v55 = vmul.f32 %v1258_v6, %v236_v43  ;;  %v438_v58 = vmax.f32 %v374_v41, 0.0  ;;  %v338_v60 = vmul.f32 %v1258_v6, %v267_v47 }
  0x19   : > { %1080 = vmatpush3.bf16.msra.mxu0 %v1180_v3  ;;  %1164 = vmatpush3.bf16.msra.mxu1 %v1180_v3  ;;  %v377_v59 = vadd.f32 %v1265_v9, %v306_v51  ;;  %v469_v62 = vmax.f32 %v405_v44, 0.0  ;;  %v339_v0 = vmul.f32 %v1258_v6, %v268_v52  ;;  %v470_v2 = vmax.f32 %v406_v48, 0.0 }
  0x1a   : > { %1081 = vmatprep.subr.bf16.mxu0 %v1181_v21  ;;  %1157 = vmatprep.subr.bf16.mxu1 %v1181_v21  ;;  %v378_v63 = vadd.f32 %v1265_v9, %v307_v55  ;;  %v439_v3 = vmax.f32 %v375_v49, 0.0  ;;  %v440_v4 = vmax.f32 %v376_v50, 0.0  ;;  %v409_v5 = vadd.f32 %v1265_v9, %v338_v60  ;;  %v244_v50 = vld [vmem:[%s1248_s30 + $0x78] sm:$0xff] }
  0x1b   : > { %1121 = vmatprep.mubr.bf16.mxu1 %v515_v40  ;;  %v471_v10 = vmax.f32 %v407_v53, 0.0  ;;  %v472_v11 = vmax.f32 %v408_v54, 0.0  ;;  %v410_v12 = vadd.f32 %v1265_v9, %v339_v0  ;;  %v308_v13 = vmul.f32 %v1258_v6, %v237_v61  ;;  %v274_v40 = vld [vmem:[%s1248_s30 + $0x168] sm:$0xff] }
  0x1c   : > { %v500_v17 = vpack.c.bf16 %v438_v58, %v437_v57  ;;  %v441_v18 = vmax.f32 %v377_v59, 0.0  ;;  %v442_v19 = vmax.f32 %v378_v63, 0.0  ;;  %v309_v20 = vmul.f32 %v1258_v6, %v238_v1  ;;  %v275_v59 = vld [vmem:[%s1248_s30 + $0x170] sm:$0xff] }
  0x1d   : > { %1082 = vmatpush3.bf16.msra.mxu0 %v1181_v21  ;;  %1165 = vmatpush3.bf16.msra.mxu1 %v1181_v21  ;;  %v271_v21 = vld [vmem:[%s1248_s30 + $0x150] sm:$0xff]  ;;  %v473_v22 = vmax.f32 %v409_v5, 0.0  ;;  %v474_v23 = vmax.f32 %v410_v12, 0.0  ;;  %v340_v24 = vmul.f32 %v1258_v6, %v269_v7  ;;  %v341_v25 = vmul.f32 %v1258_v6, %v270_v8  ;;  %v245_v5 = vld [vmem:[%s1248_s30 + $0x80] sm:$0xff]  ;;  %v246_v12 = vld [vmem:[%s1248_s30 + $0x88] sm:$0xff] }
  0x1e   : > { %1083 = vmatprep.subr.bf16.mxu0 %v1182_v39  ;;  %1158 = vmatprep.subr.bf16.mxu1 %v1182_v39  ;;  %v516_v27 = vpack.c.bf16 %v470_v2, %v469_v62  ;;  %v501_v28 = vpack.c.bf16 %v440_v4, %v439_v3  ;;  %v310_v29 = vmul.f32 %v1258_v6, %v239_v14  ;;  %v276_v4 = vld [vmem:[%s1248_s30 + $0x178] sm:$0xff] }
  0x1f   : > { %v311_v30 = vmul.f32 %v1258_v6, %v240_v15  ;;  %v517_v32 = vpack.c.bf16 %v472_v11, %v471_v10  ;;  %v1339_v33 = vadd.f32 %v1265_v9, %v308_v13  ;;  %v342_v34 = vmul.f32 %v1258_v6, %v271_v21  ;;  %v277_v13 = vld [vmem:[%s1248_s30 + $0x180] sm:$0xff] }
  0x20   : > { %v1343_v36 = vpack.c.bf16 %v442_v19, %v441_v18  ;;  %v380_v37 = vadd.f32 %v1265_v9, %v309_v20  ;;  %v343_v38 = vmul.f32 %v1258_v6, %v272_v26  ;;  %v1349_v41 = vpack.c.bf16 %v474_v23, %v473_v22  ;;  %v278_v18 = vld [vmem:[%s1248_s30 + $0x188] sm:$0xff]  ;;  %v247_v19 = vld [vmem:[%s1248_s30 + $0x90] sm:$0xff] }
  0x21   : > { %1084 = vmatpush3.bf16.msra.mxu0 %v1182_v39  ;;  %1166 = vmatpush3.bf16.msra.mxu1 %v1182_v39  ;;  %v273_v39 = vld [vmem:[%s1248_s30 + $0x160] sm:$0xff]  ;;  %v411_v42 = vadd.f32 %v1265_v9, %v340_v24  ;;  %v412_v43 = vadd.f32 %v1265_v9, %v341_v25  ;;  %v312_v44 = vmul.f32 %v1258_v6, %v241_v31  ;;  %v443_v51 = vmax.f32 %v1339_v33, 0.0  ;;  %v248_v24 = vld [vmem:[%s1248_s30 + $0x98] sm:$0xff] }
  0x22   : > { %1085 = vmatprep.subr.bf16.mxu0 %v1183_v56  ;;  %1159 = vmatprep.subr.bf16.mxu1 %v1183_v56  ;;  %v381_v46 = vadd.f32 %v1265_v9, %v310_v29  ;;  %v382_v47 = vadd.f32 %v1265_v9, %v311_v30  ;;  %v413_v48 = vadd.f32 %v1265_v9, %v342_v34  ;;  %v444_v55 = vmax.f32 %v380_v37, 0.0  ;;  %v279_v29 = vld [vmem:[%s1248_s30 + $0x190] sm:$0xff]  ;;  %v280_v34 = vld [vmem:[%s1248_s30 + $0x198] sm:$0xff] }
  0x23   : > { %v313_v49 = vmul.f32 %v1258_v6, %v242_v35  ;;  %v414_v52 = vadd.f32 %v1265_v9, %v343_v38  ;;  %v344_v53 = vmul.f32 %v1258_v6, %v273_v39  ;;  %v345_v54 = vmul.f32 %v1258_v6, %v274_v40  ;;  %v249_v40 = vld [vmem:[%s1248_s30 + $0xa0] sm:$0xff] }
  0x24   : > { %v314_v58 = vmul.f32 %v1258_v6, %v243_v45  ;;  %v475_v60 = vmax.f32 %v411_v42, 0.0  ;;  %v315_v63 = vmul.f32 %v1258_v6, %v244_v50  ;;  %v476_v0 = vmax.f32 %v412_v43, 0.0  ;;  %v281_v50 = vld [vmem:[%s1248_s30 + $0x1a0] sm:$0xff] }
  0x25   : > { %1086 = vmatpush3.bf16.msra.mxu0 %v1183_v56  ;;  %1167 = vmatpush3.bf16.msra.mxu1 %v1183_v56  ;;  %v383_v56 = vadd.f32 %v1265_v9, %v312_v44  ;;  %v384_v57 = vadd.f32 %v1265_v9, %v313_v49  ;;  %v415_v61 = vadd.f32 %v1265_v9, %v344_v53  ;;  %v445_v1 = vmax.f32 %v381_v46, 0.0  ;;  %v250_v46 = vld [vmem:[%s1248_s30 + $0xa8] sm:$0xff] }
  0x26   : > { %1087 = vmatprep.subr.bf16.mxu0 %v1184_v16  ;;  %1160 = vmatprep.subr.bf16.mxu1 %v1184_v16  ;;  %v416_v62 = vadd.f32 %v1265_v9, %v345_v54  ;;  %v446_v2 = vmax.f32 %v382_v47, 0.0  ;;  %v385_v3 = vadd.f32 %v1265_v9, %v314_v58  ;;  %v477_v7 = vmax.f32 %v413_v48, 0.0 }
  0x27   : > { %v478_v8 = vmax.f32 %v414_v52, 0.0  ;;  %v386_v10 = vadd.f32 %v1265_v9, %v315_v63  ;;  %v346_v11 = vmul.f32 %v1258_v6, %v275_v59  ;;  %v447_v14 = vmax.f32 %v383_v56, 0.0 }
  0x28   : > { %v448_v15 = vmax.f32 %v384_v57, 0.0  ;;  %v449_v20 = vmax.f32 %v385_v3, 0.0  ;;  %v347_v22 = vmul.f32 %v1258_v6, %v276_v4  ;;  %v316_v23 = vmul.f32 %v1258_v6, %v245_v5 }
  0x29   : > { %1088 = vmatpush3.bf16.msra.mxu0 %v1184_v16  ;;  %1168 = vmatpush3.bf16.msra.mxu1 %v1184_v16  ;;  %v479_v16 = vmax.f32 %v415_v61, 0.0  ;;  %v450_v21 = vmax.f32 %v386_v10, 0.0  ;;  %v503_v25 = vpack.c.bf16 %v444_v55, %v443_v51  ;;  %v519_v26 = vpack.c.bf16 %v476_v0, %v475_v60  ;;  %v282_v51 = vld [vmem:[%s1248_s30 + $0x1a8] sm:$0xff]  ;;  %v251_v55 = vld [vmem:[%s1248_s30 + $0xb0] sm:$0xff] }
  0x2a   : > { %v504_v30 = vpack.c.bf16 %v446_v2, %v445_v1  ;;  %v417_v31 = vadd.f32 %v1265_v9, %v346_v11  ;;  %v318_v33 = vmul.f32 %v1258_v6, %v247_v19  ;;  %v520_v35 = vpack.c.bf16 %v478_v8, %v477_v7  ;;  %v252_v2 = vld [vmem:[%s1248_s30 + $0xb8] sm:$0xff]  ;;  %v283_v10 = vld [vmem:[%s1248_s30 + $0x1b0] sm:$0xff] }
  0x2b   : > { %v505_v37 = vpack.c.bf16 %v448_v15, %v447_v14  ;;  %v319_v39 = vmul.f32 %v1258_v6, %v248_v24  ;;  %v1392_v42 = vpack.c.bf16 %v450_v21, %v449_v20  ;;  %v418_v43 = vadd.f32 %v1265_v9, %v347_v22  ;;  %v284_v15 = vld [vmem:[%s1248_s30 + $0x1b8] sm:$0xff]  ;;  %v253_v20 = vld [vmem:[%s1248_s30 + $0xc0] sm:$0xff]  ;;  %v254_v21 = vld [vmem:[%s1248_s30 + $0xc8] sm:$0xff] }
  0x2c   : > { %1090 = vmatmul.mubr.bf16.vlgmr.msra.gmra.mxu0 %v500_v17  ;;  %1122 = vmatmul.mubr.bf16.vlgmr.msra.gmra.mxu1 %v516_v27  ;;  %v480_v17 = vmax.f32 %v416_v62, 0.0  ;;  %v317_v27 = vmul.f32 %v1258_v6, %v246_v12  ;;  %v387_v44 = vadd.f32 %v1265_v9, %v316_v23  ;;  %v350_v45 = vmul.f32 %v1258_v6, %v279_v29 }
  0x2d   : > { %1093 = vmatprep.mubr.bf16.mxu0 %v501_v28  ;;  %1125 = vmatprep.mubr.bf16.mxu1 %v517_v32  ;;  %v348_v28 = vmul.f32 %v1258_v6, %v277_v13  ;;  %v349_v32 = vmul.f32 %v1258_v6, %v278_v18  ;;  %v351_v49 = vmul.f32 %v1258_v6, %v280_v34  ;;  %v481_v52 = vmax.f32 %v417_v31, 0.0 }
  0x2e   : > { %v521_v38 = vpack.c.bf16 %v480_v17, %v479_v16  ;;  %v388_v47 = vadd.f32 %v1265_v9, %v317_v27  ;;  %v389_v54 = vadd.f32 %v1265_v9, %v318_v33  ;;  %v421_v56 = vadd.f32 %v1265_v9, %v350_v45  ;;  %v288_v45 = vld [vmem:[%s1248_s30 + $0x1d8] sm:$0xff] }
  0x2f   : > { %v419_v48 = vadd.f32 %v1265_v9, %v348_v28  ;;  %v420_v53 = vadd.f32 %v1265_v9, %v349_v32  ;;  %v422_v57 = vadd.f32 %v1265_v9, %v351_v49  ;;  %v321_v58 = vmul.f32 %v1258_v6, %v250_v46  ;;  %v286_v32 = vld [vmem:[%s1248_s30 + $0x1c8] sm:$0xff] }
  0x30   : > { %v482_v59 = vmax.f32 %v418_v43, 0.0  ;;  %v352_v61 = vmul.f32 %v1258_v6, %v281_v50  ;;  %v353_v62 = vmul.f32 %v1258_v6, %v282_v51  ;;  %v451_v63 = vmax.f32 %v387_v44, 0.0  ;;  %v257_v50 = vld [vmem:[%s1248_s30 + $0xe0] sm:$0xff] }
  0x31   : > { %v452_v0 = vmax.f32 %v388_v47, 0.0  ;;  %v392_v1 = vadd.f32 %v1265_v9, %v321_v58  ;;  %v322_v3 = vmul.f32 %v1258_v6, %v251_v55  ;;  %v483_v4 = vmax.f32 %v419_v48, 0.0  ;;  %v289_v58 = vld [vmem:[%s1248_s30 + $0x1e0] sm:$0xff] }
  0x32   : > { %v484_v5 = vmax.f32 %v420_v53, 0.0  ;;  %v423_v7 = vadd.f32 %v1265_v9, %v352_v61  ;;  %v424_v8 = vadd.f32 %v1265_v9, %v353_v62  ;;  %v453_v11 = vmax.f32 %v389_v54, 0.0 }
  0x33   : > { %v485_v13 = vmax.f32 %v421_v56, 0.0  ;;  %v486_v14 = vmax.f32 %v422_v57, 0.0  ;;  %v522_v16 = vpack.c.bf16 %v482_v59, %v481_v52  ;;  %v456_v18 = vmax.f32 %v392_v1, 0.0  ;;  %v290_v59 = vld [vmem:[%s1248_s30 + $0x1e8] sm:$0xff] }
  0x34   : > { %1094 = vmatmul.mubr.bf16.gmra.mxu0 %v1343_v36  ;;  %1126 = vmatmul.mubr.bf16.gmra.mxu1 %v1349_v41  ;;  %v320_v36 = vmul.f32 %v1258_v6, %v249_v40  ;;  %v390_v41 = vadd.f32 %v1265_v9, %v319_v39  ;;  %v323_v19 = vmul.f32 %v1258_v6, %v252_v2  ;;  %v487_v28 = vmax.f32 %v423_v7, 0.0 }
  0x35   : > { %1097 = vmatprep.mubr.bf16.mxu0 %v503_v25  ;;  %1129 = vmatprep.mubr.bf16.mxu1 %v519_v26  ;;  %v507_v22 = vpack.c.bf16 %v452_v0, %v451_v63  ;;  %v1427_v23 = vadd.f32 %v1265_v9, %v322_v3  ;;  %v354_v24 = vmul.f32 %v1258_v6, %v283_v10  ;;  %v285_v25 = vld [vmem:[%s1248_s30 + $0x1c0] sm:$0xff]  ;;  %v255_v26 = vld [vmem:[%s1248_s30 + $0xd0] sm:$0xff]  ;;  %v488_v29 = vmax.f32 %v424_v8, 0.0 }
  0x36   : > { %v391_v60 = vadd.f32 %v1265_v9, %v320_v36  ;;  %v454_v12 = vmax.f32 %v390_v41, 0.0  ;;  %v523_v27 = vpack.c.bf16 %v484_v5, %v483_v4  ;;  %v355_v31 = vmul.f32 %v1258_v6, %v284_v15  ;;  %v258_v36 = vld [vmem:[%s1248_s30 + $0xe8] sm:$0xff]  ;;  %v259_v0 = vld [vmem:[%s1248_s30 + $0xf0] sm:$0xff]  ;;  %v260_v5 = vld [vmem:[%s1248_s30 + $0xf8] sm:$0xff] }
  0x37   : > { %v1437_v34 = vpack.c.bf16 %v486_v14, %v485_v13  ;;  %v325_v39 = vmul.f32 %v1258_v6, %v254_v21  ;;  %v1445_v40 = vadd.f32 %v1265_v9, %v323_v19  ;;  %v356_v43 = vmul.f32 %v1258_v6, %v285_v25 }
  0x38   : > { %v455_v17 = vmax.f32 %v391_v60, 0.0  ;;  %v1435_v33 = vpack.c.bf16 %v454_v12, %v453_v11  ;;  %v326_v44 = vmul.f32 %v1258_v6, %v255_v26  ;;  %v457_v46 = vmax.f32 %v1427_v23, 0.0 }
  0x39   : > { %v1452_v47 = vadd.f32 %v1265_v9, %v354_v24  ;;  %v357_v48 = vmul.f32 %v1258_v6, %v286_v32  ;;  %v525_v51 = vpack.c.bf16 %v488_v29, %v487_v28  ;;  %v1458_v52 = vadd.f32 %v1265_v9, %v355_v31 }
  0x3a   : > { %v397_v53 = vadd.f32 %v1265_v9, %v326_v44  ;;  %v1467_v41 = vadd.f32 %v1265_v9, %v325_v39  ;;  %v359_v57 = vmul.f32 %v1258_v6, %v288_v45  ;;  %v427_v60 = vadd.f32 %v1265_v9, %v356_v43 }
  0x3b   : > { %v328_v63 = vmul.f32 %v1258_v6, %v257_v50  ;;  %v428_v1 = vadd.f32 %v1265_v9, %v357_v48  ;;  %v329_v4 = vmul.f32 %v1258_v6, %v258_v36  ;;  %v360_v10 = vmul.f32 %v1258_v6, %v289_v58 }
  0x3c   : > { %1098 = vmatmul.mubr.bf16.gmra.mxu0 %v504_v30  ;;  %1130 = vmatmul.mubr.bf16.gmra.mxu1 %v520_v35  ;;  %v256_v30 = vld [vmem:[%s1248_s30 + $0xd8] sm:$0xff]  ;;  %v324_v35 = vmul.f32 %v1258_v6, %v253_v20  ;;  %v461_v61 = vmax.f32 %v397_v53, 0.0  ;;  %v430_v3 = vadd.f32 %v1265_v9, %v359_v57  ;;  %v361_v11 = vmul.f32 %v1258_v6, %v290_v59 }
  0x3d   : > { %1101 = vmatprep.mubr.bf16.mxu0 %v505_v37  ;;  %1133 = vmatprep.mubr.bf16.mxu1 %v521_v38  ;;  %v287_v37 = vld [vmem:[%s1248_s30 + $0x1d0] sm:$0xff]  ;;  %v1442_v38 = vpack.c.bf16 %v456_v18, %v455_v17  ;;  %v327_v49 = vmul.f32 %v1258_v6, %v256_v30  ;;  %v399_v8 = vadd.f32 %v1265_v9, %v328_v63  ;;  %v458_v31 = vmax.f32 %v1445_v40, 0.0 }
  0x3e   : > { %v358_v54 = vmul.f32 %v1258_v6, %v287_v37  ;;  %v1464_v55 = vadd.f32 %v1265_v9, %v324_v35  ;;  %v494_v13 = vmax.f32 %v430_v3, 0.0  ;;  %v400_v14 = vadd.f32 %v1265_v9, %v329_v4 }
  0x3f   : > { %v398_v56 = vadd.f32 %v1265_v9, %v327_v49  ;;  %v330_v15 = vmul.f32 %v1258_v6, %v259_v0  ;;  %v463_v17 = vmax.f32 %v399_v8, 0.0  ;;  %v431_v18 = vadd.f32 %v1265_v9, %v360_v10 }
  0x40   : > { %v429_v62 = vadd.f32 %v1265_v9, %v358_v54  ;;  %v432_v19 = vadd.f32 %v1265_v9, %v361_v11  ;;  %v331_v20 = vmul.f32 %v1258_v6, %v260_v5  ;;  %v489_v39 = vmax.f32 %v1452_v47, 0.0 }
  0x41   : > { %v462_v2 = vmax.f32 %v398_v56, 0.0  ;;  %v401_v24 = vadd.f32 %v1265_v9, %v330_v15  ;;  %v495_v26 = vmax.f32 %v431_v18, 0.0  ;;  %v490_v45 = vmax.f32 %v1458_v52, 0.0 }
  0x42   : > { %v493_v7 = vmax.f32 %v429_v62, 0.0  ;;  %v402_v28 = vadd.f32 %v1265_v9, %v331_v20  ;;  %v460_v40 = vmax.f32 %v1467_v41, 0.0  ;;  %v491_v49 = vmax.f32 %v427_v60, 0.0 }
  0x43   : > { %v512_v12 = vpack.c.bf16 %v462_v2, %v461_v61  ;;  %v465_v30 = vmax.f32 %v401_v24, 0.0  ;;  %v492_v47 = vmax.f32 %v428_v1, 0.0 }
  0x44   : > { %1102 = vmatmul.mubr.bf16.gmra.mxu0 %v1392_v42  ;;  %1134 = vmatmul.mubr.bf16.gmra.mxu1 %v522_v16  ;;  %v291_v42 = vld [vmem:[%s1248_s30 + $0x1f0] sm:$0xff]  ;;  %v292_v16 = vld [vmem:[%s1248_s30 + $0x1f8] sm:$0xff]  ;;  %v528_v21 = vpack.c.bf16 %v494_v13, %v493_v7  ;;  %v466_v43 = vmax.f32 %v402_v28, 0.0 }
  0x45   : > { %1105 = vmatprep.mubr.bf16.mxu0 %v507_v22  ;;  %1137 = vmatprep.mubr.bf16.mxu1 %v523_v27  ;;  %v464_v22 = vmax.f32 %v400_v14, 0.0  ;;  %v362_v25 = vmul.f32 %v1258_v6, %v291_v42  ;;  %v496_v27 = vmax.f32 %v432_v19, 0.0  ;;  %v363_v29 = vmul.f32 %v1258_v6, %v292_v16 }
  0x46   : > { %v459_v6 = vmax.f32 %v1464_v55, 0.0  ;;  %v514_v50 = vpack.c.bf16 %v466_v43, %v465_v30  ;;  %v527_v52 = vpack.c.bf16 %v492_v47, %v491_v49 }
  0x47   : > { %v513_v32 = vpack.c.bf16 %v464_v22, %v463_v17  ;;  %v433_v35 = vadd.f32 %v1265_v9, %v362_v25  ;;  %v529_v37 = vpack.c.bf16 %v496_v27, %v495_v26  ;;  %v434_v44 = vadd.f32 %v1265_v9, %v363_v29 }
  0x48   : > { %v510_v9 = vpack.c.bf16 %v458_v31, %v457_v46 }
  0x49   : > { %v497_v48 = vmax.f32 %v433_v35, 0.0  ;;  %v498_v53 = vmax.f32 %v434_v44, 0.0 }
  0x4b   : > { %v530_v54 = vpack.c.bf16 %v498_v53, %v497_v48 }
  0x4c   : > { %1106 = vmatmul.mubr.bf16.gmra.mxu0 %v1435_v33  ;;  %1138 = vmatmul.mubr.bf16.gmra.mxu1 %v1437_v34  ;;  %v526_v33 = vpack.c.bf16 %v490_v45, %v489_v39  ;;  %v511_v34 = vpack.c.bf16 %v460_v40, %v459_v6 }
  0x4d   : > { %1109 = vmatprep.mubr.bf16.mxu0 %v1442_v38  ;;  %1141 = vmatprep.mubr.bf16.mxu1 %v525_v51  ;;  %v1511_v38 = vld [vmem:[%s1655_s4] ss:$0 sm:$0xff] }
  0x54   : > { %1110 = vmatmul.mubr.bf16.gmra.mxu0 %v510_v9  ;;  %1142 = vmatmul.mubr.bf16.gmra.mxu1 %v526_v33 }
  0x55   : > { %1113 = vmatprep.mubr.bf16.mxu0 %v511_v34  ;;  %1145 = vmatprep.mubr.bf16.mxu1 %v527_v52 }
  0x5c   : > { %1114 = vmatmul.mubr.bf16.gmra.mxu0 %v512_v12  ;;  %1146 = vmatmul.mubr.bf16.gmra.mxu1 %v528_v21 }
  0x5d   : > { %1117 = vmatprep.mubr.bf16.mxu0 %v513_v32  ;;  %1149 = vmatprep.mubr.bf16.mxu1 %v529_v37 }
  0x64   : > { %1118 = vmatmul.mubr.bf16.gmra.mxu0 %v514_v50  ;;  %1150 = vmatmul.mubr.bf16.gmra.mxu1 %v530_v54 }
  0xec   : > { %v1091_v23 = vpop.f32.mrf.mxu0  ;;  %v1123_v46 = vpop.f32.mrf.mxu1 }
  0xed   : > { %v645_v51 = vadd.f32 %v1091_v23, %v1511_v38  ;;  %v773_v36 = vadd.f32 %v1123_v46, %v1511_v38 }
  0xee   : > { %v636_v55 = vpop.f32.mrf.mxu0  ;;  %v764_v41 = vpop.f32.mrf.mxu1 }
  0xef   : > { %893 = vst [vmem:[%s1518_s26 + $0x10] sm:$0xff] %v645_v51  ;;  %925 = vst [vmem:[%s1518_s26 + $0x110] sm:$0xff] %v773_v36  ;;  %v637_v56 = vadd.f32 %v1511_v38, %v636_v55  ;;  %v765_v57 = vadd.f32 %v1511_v38, %v764_v41 }
  0xf0   : > { %v1092_v58 = vpop.f32.mrf.mxu0  ;;  %v1124_v59 = vpop.f32.mrf.mxu1 }
  0xf1   : > { %891 = vst [vmem:[%s1518_s26] sm:$0xff] %v637_v56  ;;  %923 = vst [vmem:[%s1518_s26 + $0x100] sm:$0xff] %v765_v57  ;;  %v648_v60 = vadd.f32 %v1092_v58, %v1511_v38  ;;  %v776_v61 = vadd.f32 %v1124_v59, %v1511_v38 }
  0xf2   : > { %v639_v62 = vpop.f32.mrf.mxu0  ;;  %v767_v63 = vpop.f32.mrf.mxu1 }
  0xf3   : > { %894 = vst [vmem:[%s1518_s26 + $0x18] sm:$0xff] %v648_v60  ;;  %926 = vst [vmem:[%s1518_s26 + $0x118] sm:$0xff] %v776_v61  ;;  %v640_v0 = vadd.f32 %v1511_v38, %v639_v62  ;;  %v768_v1 = vadd.f32 %v1511_v38, %v767_v63 }
  0xf4   : > { %v1095_v2 = vpop.f32.mrf.mxu0  ;;  %v1127_v3 = vpop.f32.mrf.mxu1 }
  0xf5   : > { %892 = vst [vmem:[%s1518_s26 + $0x8] sm:$0xff] %v640_v0  ;;  %924 = vst [vmem:[%s1518_s26 + $0x108] sm:$0xff] %v768_v1  ;;  %v661_v4 = vadd.f32 %v1095_v2, %v1511_v38  ;;  %v789_v5 = vadd.f32 %v1127_v3, %v1511_v38 }
  0xf6   : > { %v652_v7 = vpop.f32.mrf.mxu0  ;;  %v780_v8 = vpop.f32.mrf.mxu1 }
  0xf7   : > { %897 = vst [vmem:[%s1518_s26 + $0x30] sm:$0xff] %v661_v4  ;;  %929 = vst [vmem:[%s1518_s26 + $0x130] sm:$0xff] %v789_v5  ;;  %v653_v10 = vadd.f32 %v1511_v38, %v652_v7  ;;  %v781_v11 = vadd.f32 %v1511_v38, %v780_v8 }
  0xf8   : > { %v1096_v42 = vpop.f32.mrf.mxu0  ;;  %v1128_v12 = vpop.f32.mrf.mxu1 }
  0xf9   : > { %895 = vst [vmem:[%s1518_s26 + $0x20] sm:$0xff] %v653_v10  ;;  %927 = vst [vmem:[%s1518_s26 + $0x120] sm:$0xff] %v781_v11  ;;  %v664_v13 = vadd.f32 %v1096_v42, %v1511_v38  ;;  %v792_v14 = vadd.f32 %v1128_v12, %v1511_v38 }
  0xfa   : > { %v655_v15 = vpop.f32.mrf.mxu0  ;;  %v783_v16 = vpop.f32.mrf.mxu1 }
  0xfb   : > { %898 = vst [vmem:[%s1518_s26 + $0x38] sm:$0xff] %v664_v13  ;;  %930 = vst [vmem:[%s1518_s26 + $0x138] sm:$0xff] %v792_v14  ;;  %v656_v17 = vadd.f32 %v1511_v38, %v655_v15  ;;  %v784_v18 = vadd.f32 %v1511_v38, %v783_v16 }
  0xfc   : > { %v1099_v19 = vpop.f32.mrf.mxu0  ;;  %v1131_v20 = vpop.f32.mrf.mxu1 }
  0xfd   : > { %896 = vst [vmem:[%s1518_s26 + $0x28] sm:$0xff] %v656_v17  ;;  %928 = vst [vmem:[%s1518_s26 + $0x128] sm:$0xff] %v784_v18  ;;  %v677_v21 = vadd.f32 %v1099_v19, %v1511_v38  ;;  %v805_v22 = vadd.f32 %v1131_v20, %v1511_v38 }
  0xfe   : > { %v668_v24 = vpop.f32.mrf.mxu0  ;;  %v796_v25 = vpop.f32.mrf.mxu1 }
  0xff   : > { %901 = vst [vmem:[%s1518_s26 + $0x50] sm:$0xff] %v677_v21  ;;  %933 = vst [vmem:[%s1518_s26 + $0x150] sm:$0xff] %v805_v22  ;;  %v669_v26 = vadd.f32 %v1511_v38, %v668_v24  ;;  %v797_v27 = vadd.f32 %v1511_v38, %v796_v25 }
 0x100   : > { %v1100_v28 = vpop.f32.mrf.mxu0  ;;  %v1132_v29 = vpop.f32.mrf.mxu1 }
 0x101   : > { %899 = vst [vmem:[%s1518_s26 + $0x40] sm:$0xff] %v669_v26  ;;  %931 = vst [vmem:[%s1518_s26 + $0x140] sm:$0xff] %v797_v27  ;;  %v680_v31 = vadd.f32 %v1100_v28, %v1511_v38  ;;  %v808_v32 = vadd.f32 %v1132_v29, %v1511_v38 }
 0x102   : > { %v671_v30 = vpop.f32.mrf.mxu0  ;;  %v799_v35 = vpop.f32.mrf.mxu1 }
 0x103   : > { %902 = vst [vmem:[%s1518_s26 + $0x58] sm:$0xff] %v680_v31  ;;  %934 = vst [vmem:[%s1518_s26 + $0x158] sm:$0xff] %v808_v32  ;;  %v672_v39 = vadd.f32 %v1511_v38, %v671_v30  ;;  %v800_v37 = vadd.f32 %v1511_v38, %v799_v35 }
 0x104   : > { %v1103_v43 = vpop.f32.mrf.mxu0  ;;  %v1135_v44 = vpop.f32.mrf.mxu1 }
 0x105   : > { %900 = vst [vmem:[%s1518_s26 + $0x48] sm:$0xff] %v672_v39  ;;  %932 = vst [vmem:[%s1518_s26 + $0x148] sm:$0xff] %v800_v37  ;;  %v693_v45 = vadd.f32 %v1103_v43, %v1511_v38  ;;  %v821_v6 = vadd.f32 %v1135_v44, %v1511_v38 }
 0x106   : > { %v684_v40 = vpop.f32.mrf.mxu0  ;;  %v812_v48 = vpop.f32.mrf.mxu1 }
 0x107   : > { %905 = vst [vmem:[%s1518_s26 + $0x70] sm:$0xff] %v693_v45  ;;  %937 = vst [vmem:[%s1518_s26 + $0x170] sm:$0xff] %v821_v6  ;;  %v685_v49 = vadd.f32 %v1511_v38, %v684_v40  ;;  %v813_v47 = vadd.f32 %v1511_v38, %v812_v48 }
 0x108   : > { %v1104_v50 = vpop.f32.mrf.mxu0  ;;  %v1136_v53 = vpop.f32.mrf.mxu1 }
 0x109   : > { %903 = vst [vmem:[%s1518_s26 + $0x60] sm:$0xff] %v685_v49  ;;  %935 = vst [vmem:[%s1518_s26 + $0x160] sm:$0xff] %v813_v47  ;;  %v696_v54 = vadd.f32 %v1104_v50, %v1511_v38  ;;  %v824_v9 = vadd.f32 %v1136_v53, %v1511_v38 }
 0x10a   : > { %v687_v33 = vpop.f32.mrf.mxu0  ;;  %v815_v34 = vpop.f32.mrf.mxu1 }
 0x10b   : > { %906 = vst [vmem:[%s1518_s26 + $0x78] sm:$0xff] %v696_v54  ;;  %938 = vst [vmem:[%s1518_s26 + $0x178] sm:$0xff] %v824_v9  ;;  %v688_v52 = vadd.f32 %v1511_v38, %v687_v33  ;;  %v816_v23 = vadd.f32 %v1511_v38, %v815_v34 }
 0x10c   : > { %v1107_v46 = vpop.f32.mrf.mxu0  ;;  %v1139_v51 = vpop.f32.mrf.mxu1 }
 0x10d   : > { %904 = vst [vmem:[%s1518_s26 + $0x68] sm:$0xff] %v688_v52  ;;  %936 = vst [vmem:[%s1518_s26 + $0x168] sm:$0xff] %v816_v23  ;;  %v709_v36 = vadd.f32 %v1107_v46, %v1511_v38  ;;  %v837_v55 = vadd.f32 %v1139_v51, %v1511_v38 }
 0x10e   : > { %v700_v41 = vpop.f32.mrf.mxu0  ;;  %v828_v56 = vpop.f32.mrf.mxu1 }
 0x10f   : > { %909 = vst [vmem:[%s1518_s26 + $0x90] sm:$0xff] %v709_v36  ;;  %941 = vst [vmem:[%s1518_s26 + $0x190] sm:$0xff] %v837_v55  ;;  %v701_v57 = vadd.f32 %v1511_v38, %v700_v41  ;;  %v829_v58 = vadd.f32 %v1511_v38, %v828_v56 }
 0x110   : > { %v1108_v59 = vpop.f32.mrf.mxu0  ;;  %v1140_v60 = vpop.f32.mrf.mxu1 }
 0x111   : > { %907 = vst [vmem:[%s1518_s26 + $0x80] sm:$0xff] %v701_v57  ;;  %939 = vst [vmem:[%s1518_s26 + $0x180] sm:$0xff] %v829_v58  ;;  %v712_v61 = vadd.f32 %v1108_v59, %v1511_v38  ;;  %v840_v62 = vadd.f32 %v1140_v60, %v1511_v38 }
 0x112   : > { %v703_v63 = vpop.f32.mrf.mxu0  ;;  %v831_v0 = vpop.f32.mrf.mxu1 }
 0x113   : > { %910 = vst [vmem:[%s1518_s26 + $0x98] sm:$0xff] %v712_v61  ;;  %942 = vst [vmem:[%s1518_s26 + $0x198] sm:$0xff] %v840_v62  ;;  %v704_v1 = vadd.f32 %v1511_v38, %v703_v63  ;;  %v832_v2 = vadd.f32 %v1511_v38, %v831_v0 }
 0x114   : > { %v1111_v3 = vpop.f32.mrf.mxu0  ;;  %v1143_v4 = vpop.f32.mrf.mxu1 }
 0x115   : > { %908 = vst [vmem:[%s1518_s26 + $0x88] sm:$0xff] %v704_v1  ;;  %940 = vst [vmem:[%s1518_s26 + $0x188] sm:$0xff] %v832_v2  ;;  %v725_v5 = vadd.f32 %v1111_v3, %v1511_v38  ;;  %v853_v7 = vadd.f32 %v1143_v4, %v1511_v38 }
 0x116   : > { %v716_v8 = vpop.f32.mrf.mxu0  ;;  %v844_v10 = vpop.f32.mrf.mxu1 }
 0x117   : > { %913 = vst [vmem:[%s1518_s26 + $0xb0] sm:$0xff] %v725_v5  ;;  %945 = vst [vmem:[%s1518_s26 + $0x1b0] sm:$0xff] %v853_v7  ;;  %v717_v11 = vadd.f32 %v1511_v38, %v716_v8  ;;  %v845_v42 = vadd.f32 %v1511_v38, %v844_v10 }
 0x118   : > { %v1112_v12 = vpop.f32.mrf.mxu0  ;;  %v1144_v13 = vpop.f32.mrf.mxu1 }
 0x119   : > { %911 = vst [vmem:[%s1518_s26 + $0xa0] sm:$0xff] %v717_v11  ;;  %943 = vst [vmem:[%s1518_s26 + $0x1a0] sm:$0xff] %v845_v42  ;;  %v728_v14 = vadd.f32 %v1112_v12, %v1511_v38  ;;  %v856_v15 = vadd.f32 %v1144_v13, %v1511_v38 }
 0x11a   : > { %v719_v16 = vpop.f32.mrf.mxu0  ;;  %v847_v17 = vpop.f32.mrf.mxu1 }
 0x11b   : > { %914 = vst [vmem:[%s1518_s26 + $0xb8] sm:$0xff] %v728_v14  ;;  %946 = vst [vmem:[%s1518_s26 + $0x1b8] sm:$0xff] %v856_v15  ;;  %v720_v18 = vadd.f32 %v1511_v38, %v719_v16  ;;  %v848_v19 = vadd.f32 %v1511_v38, %v847_v17 }
 0x11c   : > { %v1115_v20 = vpop.f32.mrf.mxu0  ;;  %v1147_v21 = vpop.f32.mrf.mxu1 }
 0x11d   : > { %912 = vst [vmem:[%s1518_s26 + $0xa8] sm:$0xff] %v720_v18  ;;  %944 = vst [vmem:[%s1518_s26 + $0x1a8] sm:$0xff] %v848_v19  ;;  %v741_v22 = vadd.f32 %v1115_v20, %v1511_v38  ;;  %v869_v24 = vadd.f32 %v1147_v21, %v1511_v38 }
 0x11e   : > { %v732_v25 = vpop.f32.mrf.mxu0  ;;  %v860_v26 = vpop.f32.mrf.mxu1 }
 0x11f   : > { %917 = vst [vmem:[%s1518_s26 + $0xd0] sm:$0xff] %v741_v22  ;;  %949 = vst [vmem:[%s1518_s26 + $0x1d0] sm:$0xff] %v869_v24  ;;  %v733_v27 = vadd.f32 %v1511_v38, %v732_v25  ;;  %v861_v28 = vadd.f32 %v1511_v38, %v860_v26 }
 0x120   : > { %v1116_v29 = vpop.f32.mrf.mxu0  ;;  %v1148_v31 = vpop.f32.mrf.mxu1 }
 0x121   : > { %915 = vst [vmem:[%s1518_s26 + $0xc0] sm:$0xff] %v733_v27  ;;  %947 = vst [vmem:[%s1518_s26 + $0x1c0] sm:$0xff] %v861_v28  ;;  %v744_v32 = vadd.f32 %v1116_v29, %v1511_v38  ;;  %v872_v30 = vadd.f32 %v1148_v31, %v1511_v38 }
 0x122   : > { %v735_v35 = vpop.f32.mrf.mxu0  ;;  %v863_v39 = vpop.f32.mrf.mxu1 }
 0x123   : > { %918 = vst [vmem:[%s1518_s26 + $0xd8] sm:$0xff] %v744_v32  ;;  %950 = vst [vmem:[%s1518_s26 + $0x1d8] sm:$0xff] %v872_v30  ;;  %v736_v37 = vadd.f32 %v1511_v38, %v735_v35  ;;  %v864_v43 = vadd.f32 %v1511_v38, %v863_v39 }
 0x124   : > { %v1119_v44 = vpop.f32.mrf.mxu0  ;;  %v1151_v45 = vpop.f32.mrf.mxu1 }
 0x125   : > { %916 = vst [vmem:[%s1518_s26 + $0xc8] sm:$0xff] %v736_v37  ;;  %948 = vst [vmem:[%s1518_s26 + $0x1c8] sm:$0xff] %v864_v43  ;;  %v757_v6 = vadd.f32 %v1119_v44, %v1511_v38  ;;  %v885_v40 = vadd.f32 %v1151_v45, %v1511_v38 }
 0x126   : > { %v748_v48 = vpop.f32.mrf.mxu0  ;;  %v876_v49 = vpop.f32.mrf.mxu1 }
 0x127   : > { %921 = vst [vmem:[%s1518_s26 + $0xf0] sm:$0xff] %v757_v6  ;;  %953 = vst [vmem:[%s1518_s26 + $0x1f0] sm:$0xff] %v885_v40  ;;  %v749_v47 = vadd.f32 %v1511_v38, %v748_v48  ;;  %v877_v50 = vadd.f32 %v1511_v38, %v876_v49 }
 0x128   : > { %v1120_v53 = vpop.f32.mrf.mxu0  ;;  %v1152_v54 = vpop.f32.mrf.mxu1 }
 0x129   : > { %919 = vst [vmem:[%s1518_s26 + $0xe0] sm:$0xff] %v749_v47  ;;  %951 = vst [vmem:[%s1518_s26 + $0x1e0] sm:$0xff] %v877_v50  ;;  %v760_v9 = vadd.f32 %v1120_v53, %v1511_v38  ;;  %v888_v33 = vadd.f32 %v1152_v54, %v1511_v38 }
 0x12a   : > { %v751_v34 = vpop.f32.mrf.mxu0  ;;  %v879_v52 = vpop.f32.mrf.mxu1 }
 0x12b   : > { %922 = vst [vmem:[%s1518_s26 + $0xf8] sm:$0xff] %v760_v9  ;;  %954 = vst [vmem:[%s1518_s26 + $0x1f8] sm:$0xff] %v888_v33  ;;  %v752_v23 = vadd.f32 %v1511_v38, %v751_v34  ;;  %v880_v46 = vadd.f32 %v1511_v38, %v879_v52 }
 0x12d   : > { %920 = vst [vmem:[%s1518_s26 + $0xe8] sm:$0xff] %v752_v23  ;;  %952 = vst [vmem:[%s1518_s26 + $0x1e8] sm:$0xff] %v880_v46 }
 0x12e PF: > { %s15_s18 = sadd.s32 1, %s1191_s18  }
 0x12f   : > { %p12_p4 = scmp.ge.s32.totalorder %s15_s18, 4  }
 0x131   :  { %14 = sbr.rel (!%p12_p4) target bundleno = 1 (0x1), region = 70 }

// kernel: basic_block_3d.2
= control target key start
LH: loop header
LB: loop body
LE: loop exit
PB: predicated region body
PF: predicated region fallthrough
CT: control target
= control target key end

     0   :  { %s2029_s18 = smov 0   ;;  %s2031_s19 = smov 0   ;;  %s2515_s0 = inlined_call_operand.vmem [shape: bf16[2,8,10,10,12], index: 0, kind: input, shape index: {}]   ;;  %s2516_s1 = inlined_call_operand.vmem [shape: bf16[3,3,12,128], index: 1, kind: input, shape index: {}]   ;;  %s2517_s2 = inlined_call_operand.vmem [shape: f32[1,128], index: 2, kind: input, shape index: {}]   ;;  %s2518_s3 = inlined_call_operand.vmem [shape: f32[2,8,64,128], index: 3, kind: output, shape index: {0}]   ;;  %s2519_s4 = inlined_call_operand.vmem [shape: f32[2,8,1,128], index: 4, kind: output, shape index: {1}]   ;;  %s2520_s5 = inlined_call_operand.vmem [shape: f32[2,8,1,128], index: 5, kind: output, shape index: {2}]  }
   0x1   :  { %s2033_s20 = smov 0   ;;  %s2035_s21 = smov 0  }
   0x2   :  { %s2037_s22 = smov 0  }
   0x3 LB: > { %s25_s23 = sadd.s32 1, %s1989_s20  ;;  %s28_s24 = sadd.s32 1, %s1993_s21  ;;  %s1997_s22 = sphi %s2037_s22, %s16_s22   ;;  %s1993_s21 = sphi %s2035_s21, %s2528_s21   ;;  %s1989_s20 = sphi %s2033_s20, %s2527_s20   ;;  %s1985_s19 = sphi %s2031_s19, %s2526_s19   ;;  %s1981_s18 = sphi %s2029_s18, %s2525_s18  }
   0x4   : > { %p26_p0 = scmp.ge.s32.totalorder %s25_s23, 8  ;;  %p1644_p1 = scmp.ge.s32.totalorder %s1997_s22, 1 }
   0x5   : > { %p216_p2 = scmp.lt.s32.totalorder %s1997_s22, 17 }
   0x6   : > { %s2530_s23 = smov (%p26_p0, %s25_s23), 0  ;;  %s2532_s24 = smov (!%p26_p0, %s28_s24), %s1993_s21 }
   0x7   : > { %p217_p3 = pnand %p1644_p1, %p216_p2  ;;  %p30_p4 = scmp.ge.s32.totalorder %s2532_s24, 2 }
   0x8   : > { %p266_p5 = scmp.lt.s32.totalorder (!%p217_p3), %s1985_s19, 1  ;;  %p268_p6 = scmp.lt.s32.totalorder (!%p217_p3), %s1981_s18, 7 }
   0x9   : > { %s2534_s24 = smov (%p30_p4, %s2532_s24), 0  ;;  %220 = sbr.rel (%p217_p3) target bundleno = 339 (0x153), region = 32 }
   0xe   : > { %v1941_v0 = vld [vmem:[%s2516_s1 + $0x8] sm:$0x3f]   ;;  %vm469_vm0 = vcmask 1045504   ;;  %s2536_s19 = smov (!%p266_p5, %s1985_s19), 1  ;;  %v1942_v2 = vld [vmem:[%s2516_s1] sm:$0x3f]  }
   0xf   : > { %1890 = vmatprep.subr.msk.bf16.mxu1 %vm469_vm0, %v1941_v0  ;;  %1889 = vmatprep.subr.msk.bf16.mxu0 %vm469_vm0, %v1941_v0  ;;  %v471_v1 = vsel %vm469_vm0, %v1941_v0, 0  ;;  %s2538_s18 = smov (!%p268_p6, %s1981_s18), 7  ;;  %s1900_s29 = smul.u32 160, %s2536_s19  ;;  %v1943_v3 = vld [vmem:[%s2516_s1 + $0x10] sm:$0x3f]   ;;  %vm456_vm3 = vcmask 97280  }
  0x10   : > { %1888 = vmatpush3.bf16.msra.mxu1 %v471_v1  ;;  %1798 = vmatpush3.bf16.msra.mxu0 %v471_v1  ;;  %s1899_s7 = smul.u32 20, %s2538_s18  ;;  %vm321_vm1 = vsmask.f32 3328  ;;  %vm322_vm2 = vsmask.f32 7440  ;;  %v2131_v38 = vsel %vm469_vm0, %v1942_v2, 0 }
  0x11   : > { %1891 = vmatprep.subr.msk.bf16.mxu1 %vm469_vm0, %v1942_v2  ;;  %1892 = vmatprep.subr.msk.bf16.mxu0 %vm469_vm0, %v1943_v3  ;;  %vm2116_vm4 = vmor %vm321_vm1, %vm322_vm2  ;;  %v2134_v39 = vsel %vm469_vm0, %v1943_v3, 0  ;;  %vm651_vm5 = vcmask 1042432   ;;  %vm652_vm6 = vcmask 1046532   ;;  %s1649_s16 = sshll.u32 %s2536_s19, 3 }
  0x12   : > { %s272_s8 = sadd.s32 %s1900_s29, %s1899_s7  ;;  %vm2206_vm7 = vmor %vm651_vm5, %vm652_vm6  ;;  %s1646_s7 = sshll.u32 %s2538_s18, 3 }
  0x13   : > { %s1645_s9 = sshll.u32 %s272_s8, 2  ;;  %s1647_s8 = sshll.u32 %s2536_s19, 6 }
  0x14   : > { %s2082_s12 = scalar_lea.vmem %s2515_s0, %s1645_s9  ;;  %s281_s9 = sadd.s32 %s1647_s8, %s1646_s7 }
  0x15   : > { %v2085_v4 = vld [vmem:[%s2082_s12] sm:$0xf]  ;;  %v2088_v5 = vld [vmem:[%s2082_s12 + $0x4] sm:$0x1]  ;;  %v2091_v6 = vld [vmem:[%s2082_s12 + $0x8] sm:$0xf]  ;;  %s289_s17 = sadd.s32 %s1649_s16, %s2538_s18 }
  0x16   : > { %v2094_v7 = vld [vmem:[%s2082_s12 + $0xc] sm:$0x1]  ;;  %v2097_v8 = vld [vmem:[%s2082_s12 + $0x10] sm:$0xf]  ;;  %v325_v9 = vshrl.u32 %v2085_v4, 16  ;;  %v328_v10 = vshll.u32 %v2085_v4, 16  ;;  %v1662_v55 = vcombine.low %v2085_v4, %v2091_v6  ;;  %s290_s27 = scalar_lea.vmem %s2519_s4, %s289_s17  ;;  %s297_s30 = scalar_lea.vmem %s2520_s5, %s289_s17 }
  0x17   : > { %v334_v11 = vshll.u32 %v2088_v5, 16  ;;  %v339_v12 = vshrl.u32 %v2091_v6, 16  ;;  %v2104_v13 = vld [vmem:[%s2082_s12 + $0x14] sm:$0x1]  ;;  %v342_v14 = vshll.u32 %v2091_v6, 16  ;;  %v348_v15 = vshll.u32 %v2094_v7, 16 }
  0x18   : > { %v353_v16 = vshrl.u32 %v2097_v8, 16  ;;  %v356_v17 = vshll.u32 %v2097_v8, 16  ;;  %v327_v18 = vrot.slane %v325_v9, 4  ;;  %v330_v19 = vrot.slane %v328_v10, 5  ;;  %v2111_v21 = vld [vmem:[%s2082_s12 + $0x18] sm:$0xf] }
  0x19   : > { %v341_v20 = vrot.slane %v339_v12, 4  ;;  %v344_v22 = vrot.slane %v342_v14, 5  ;;  %v336_v26 = vrot.slane %v334_v11, 5  ;;  %v362_v27 = vshll.u32 %v2104_v13, 16  ;;  %v2121_v32 = vld [vmem:[%s2082_s12 + $0x1c] sm:$0x1] }
  0x1a   : > { %v355_v23 = vrot.slane %v353_v16, 4  ;;  %v358_v24 = vrot.slane %v356_v17, 5  ;;  %v331_v25 = vor.u32 %v330_v19, %v327_v18  ;;  %v350_v30 = vrot.slane %v348_v15, 5  ;;  %v2124_v33 = vld [vmem:[%s2082_s12 + $0x20] sm:$0xf]  ;;  %s1648_s10 = sshll.u32 %s281_s9, 3 }
  0x1b   : > { %v345_v29 = vor.u32 %v344_v22, %v341_v20  ;;  %v367_v34 = vshrl.u32 %v2111_v21, 16  ;;  %v364_v36 = vrot.slane %v362_v27, 5  ;;  %v2128_v37 = vld [vmem:[%s2082_s12 + $0x24] sm:$0x1]  ;;  %v2137_v42 = vld [vmem:[%s2082_s12 + $0x28] sm:$0xf]  ;;  %s2468_s15 = scalar_lea.vmem %s2518_s3, %s1648_s10 }
  0x1c   : > { %v359_v31 = vor.u32 %v358_v24, %v355_v23  ;;  %v332_v35 = vrot.slane %v331_v25, 4  ;;  %v370_v44 = vshll.u32 %v2111_v21, 16  ;;  %v2143_v46 = vld [vmem:[%s2082_s12 + $0x2c] sm:$0x1]  ;;  %v376_v47 = vshll.u32 %v2121_v32, 16 }
  0x1d   : > { %v346_v40 = vrot.slane %v345_v29, 4  ;;  %v369_v43 = vrot.slane %v367_v34, 4  ;;  %v381_v48 = vshrl.u32 %v2124_v33, 16  ;;  %v384_v49 = vshll.u32 %v2124_v33, 16  ;;  %v2154_v52 = vld [vmem:[%s2082_s12 + $0x30] sm:$0xf] }
  0x1e   : > { %v360_v41 = vrot.slane %v359_v31, 4  ;;  %v337_v45 = vsel %vm2116_vm4, %v332_v35, %v336_v26  ;;  %v656_v51 = vrot.slane %v2088_v5, 5  ;;  %v2157_v53 = vld [vmem:[%s2082_s12 + $0x34] sm:$0x1]  ;;  %v372_v54 = vrot.slane %v370_v44, 5 }
  0x1f   : > { %v2150_v50 = vsel %vm2116_vm4, %v346_v40, %v350_v30  ;;  %v2167_v58 = vld [vmem:[%s2082_s12 + $0x38] sm:$0xf]  ;;  %v383_v59 = vrot.slane %v381_v48, 4  ;;  %v390_v60 = vshll.u32 %v2128_v37, 16  ;;  %v2171_v61 = vld [vmem:[%s2082_s12 + $0x3c] sm:$0x1] }
  0x20   : > { %v2163_v56 = vsel %vm2116_vm4, %v360_v41, %v364_v36  ;;  %v1653_v57 = vcombine.low %v337_v45, %v2150_v50  ;;  %v373_v62 = vor.u32 %v372_v54, %v369_v43  ;;  %v378_v63 = vrot.slane %v376_v47, 5  ;;  %v1947_v36 = vld [vmem:[%s2516_s1 + $0x20] sm:$0x3f]  }
  0x21   : > { %v386_v0 = vrot.slane %v384_v49, 5  ;;  %v395_v1 = vshrl.u32 %v2137_v42, 16  ;;  %v398_v2 = vshll.u32 %v2137_v42, 16  ;;  %v404_v3 = vshll.u32 %v2143_v46, 16 }
  0x22   : > { %1799 = vmatprep.mubr.msk.bf16.mxu0 %vm456_vm3, %v1653_v57  ;;  %v409_v9 = vshrl.u32 %v2154_v52, 16  ;;  %v412_v10 = vshll.u32 %v2154_v52, 16  ;;  %v374_v11 = vrot.slane %v373_v62, 4  ;;  %v418_v15 = vshll.u32 %v2157_v53, 16 }
  0x23   : > { %v387_v12 = vor.u32 %v386_v0, %v383_v59  ;;  %v397_v14 = vrot.slane %v395_v1, 4  ;;  %v392_v16 = vrot.slane %v390_v60, 5  ;;  %v400_v17 = vrot.slane %v398_v2, 5 }
  0x24   : > { %v411_v18 = vrot.slane %v409_v9, 4  ;;  %v414_v19 = vrot.slane %v412_v10, 5  ;;  %v2182_v20 = vsel %vm2116_vm4, %v374_v11, %v378_v63  ;;  %v406_v23 = vrot.slane %v404_v3, 5 }
  0x25   : > { %v388_v22 = vrot.slane %v387_v12, 4  ;;  %v423_v24 = vshrl.u32 %v2167_v58, 16  ;;  %v401_v25 = vor.u32 %v400_v17, %v397_v14  ;;  %v426_v27 = vshll.u32 %v2167_v58, 16  ;;  %v1945_v12 = vld [vmem:[%s2516_s1 + $0x18] sm:$0x3f]  }
  0x26   : > { %v415_v26 = vor.u32 %v414_v19, %v411_v18  ;;  %v432_v29 = vshll.u32 %v2171_v61, 16  ;;  %v660_v30 = vrot.slane %v2094_v7, 5  ;;  %v420_v31 = vrot.slane %v418_v15, 5  ;;  %v2276_v17 = vld [vmem:[%s2082_s12 + $0x40] sm:$0xf] }
  0x27   : > { %v425_v34 = vrot.slane %v423_v24, 4  ;;  %v2190_v35 = vcombine.low %v2163_v56, %v2182_v20  ;;  %v2197_v40 = vsel %vm2116_vm4, %v388_v22, %v392_v16  ;;  %v402_v41 = vrot.slane %v401_v25, 4  ;;  %v1953_v24 = vld [vmem:[%s2516_s1 + $0x30] sm:$0x3f]  }
  0x28   : > { %v416_v43 = vrot.slane %v415_v26, 4  ;;  %v428_v44 = vrot.slane %v426_v27, 5  ;;  %v664_v45 = vrot.slane %v2104_v13, 5  ;;  %v434_v7 = vrot.slane %v432_v29, 5 }
  0x29   : > { %v668_v47 = vrot.slane %v2121_v32, 5  ;;  %v672_v48 = vrot.slane %v2128_v37, 5  ;;  %1800 = vmatmul.mubr.msk.bf16.vlgmr.msra.gmra.mxu0 %vm456_vm3, %v2190_v35  ;;  %v2212_v54 = vsel %vm2116_vm4, %v402_v41, %v406_v23  ;;  %v676_v13 = vrot.slane %v2143_v46, 5 }
  0x2a   : > { %v429_v57 = vor.u32 %v428_v44, %v425_v34  ;;  %1818 = vmatpush3.bf16.msra.mxu0 %v2134_v39  ;;  %v1671_v32 = vrot.slane %v2085_v4, 9  ;;  %v2219_v37 = vsel %vm2116_vm4, %v416_v43, %v420_v31  ;;  %v2223_v59 = vcombine.low %v2197_v40, %v2212_v54  ;;  %v2313_v4 = vld [vmem:[%s2082_s12 + $0x4c] sm:$0x1] }
  0x2b   : > { %v1672_v60 = vrot.slane %v2091_v6, 9  ;;  %v1673_v62 = vrot.slane %v2097_v8, 9  ;;  %1894 = vmatprep.subr.msk.bf16.mxu0 %vm469_vm0, %v1947_v36  ;;  %v1674_v46 = vrot.slane %v2111_v21, 9  ;;  %v1675_v0 = vrot.slane %v2124_v33, 9 }
  0x2c   : > { %v430_v63 = vrot.slane %v429_v57, 4  ;;  %v657_v39 = vsel %vm2206_vm7, %v1671_v32, %v656_v51  ;;  %1803 = vmatprep.mubr.msk.bf16.mxu1 %vm456_vm3, %v2223_v59  ;;  %v680_v1 = vrot.slane %v2157_v53, 5  ;;  %v1676_v51 = vrot.slane %v2137_v42, 9 }
  0x2d   : > { %v2239_v2 = vsel %vm2206_vm7, %v1672_v60, %v660_v30  ;;  %v2243_v5 = vsel %vm2206_vm7, %v1673_v62, %v664_v45  ;;  %v2253_v10 = vsel %vm2206_vm7, %v1674_v46, %v668_v47  ;;  %v2257_v53 = vsel %vm2206_vm7, %v1675_v0, %v672_v48  ;;  %v2324_v30 = vld [vmem:[%s2082_s12 + $0x48] sm:$0xf] }
  0x2e   : > { %v2248_v3 = vsel %vm2116_vm4, %v430_v63, %v434_v7  ;;  %v1681_v9 = vcombine.low %v657_v39, %v2239_v2  ;;  %v2268_v14 = vcombine.low %v2243_v5, %v2253_v10  ;;  %v936_v15 = vsel %vm469_vm0, %v1947_v36, 0  ;;  %v1951_v45 = vld [vmem:[%s2516_s1 + $0x28] sm:$0x3f]   ;;  %v316_v7 = vld [vmem:[%s2082_s12 + $0x44] sm:$0x1] }
  0x2f   : > { %v2261_v11 = vcombine.low %v2219_v37, %v2248_v3  ;;  %v2273_v16 = vsel %vm2206_vm7, %v1676_v51, %v676_v13  ;;  %v1677_v19 = vrot.slane %v2154_v52, 9  ;;  %v1678_v22 = vrot.slane %v2167_v58, 9 }
  0x30   : > { %1819 = vmatprep.mubr.msk.bf16.mxu0 %vm456_vm3, %v1681_v9  ;;  %v2281_v18 = vcombine.low %v2257_v53, %v2273_v16  ;;  %v684_v23 = vrot.slane %v2171_v61, 5  ;;  %v897_v26 = vshrl.u32 %v2276_v17, 16  ;;  %v1664_v27 = vcombine.low %v2124_v33, %v2137_v42 }
  0x31   : > { %1804 = vmatmul.mubr.msk.bf16.vlgmr.msra.gmra.mxu1 %vm456_vm3, %v2261_v11  ;;  %1820 = vmatmul.mubr.msk.bf16.vlgmr.msra.gmra.mxu0 %vm456_vm3, %v2268_v14  ;;  %v2300_v61 = vsel %vm2206_vm7, %v1677_v19, %v680_v1  ;;  %v1208_v36 = vshrl.u32 %v2324_v30, 16  ;;  %v1211_v41 = vshll.u32 %v2324_v30, 16  ;;  %v1703_v43 = vcombine.low %v2150_v50, %v2163_v56 }
  0x32   : > { %1808 = vmatpush3.bf16.msra.mxu1 %v2131_v38  ;;  %1809 = vmatprep.mubr.msk.bf16.mxu1 %vm456_vm3, %v1662_v55  ;;  %v2304_v25 = vsel %vm2206_vm7, %v1678_v22, %v684_v23  ;;  %v900_v38 = vshll.u32 %v2276_v17, 16  ;;  %v1663_v55 = vcombine.low %v2097_v8, %v2111_v21  ;;  %v899_v31 = vrot.slane %v897_v26, 4 }
  0x33   : > { %1893 = vmatprep.subr.msk.bf16.mxu1 %vm469_vm0, %v1945_v12  ;;  %1838 = vmatpush3.bf16.msra.mxu0 %v936_v15  ;;  %v2321_v29 = vcombine.low %v2300_v61, %v2304_v25  ;;  %v821_v44 = vsel %vm469_vm0, %v1945_v12, 0  ;;  %v1217_v47 = vshll.u32 %v2313_v4, 16  ;;  %v1210_v48 = vrot.slane %v1208_v36, 4  ;;  %v1956_v12 = vld [vmem:[%s2516_s1 + $0x38] sm:$0x3f]  }
  0x34   : > { %1823 = vmatprep.mubr.msk.bf16.mxu0 %vm456_vm3, %v2281_v18  ;;  %1896 = vmatprep.subr.msk.bf16.mxu0 %vm469_vm0, %v1953_v24  ;;  %v902_v34 = vrot.slane %v900_v38, 5  ;;  %v1213_v57 = vrot.slane %v1211_v41, 5  ;;  %v906_v56 = vshll.u32 %v316_v7, 16  ;;  %v1704_v62 = vcombine.low %v2182_v20, %v2197_v40  ;;  %v1957_v20 = vld [vmem:[%s2516_s1 + $0x40] sm:$0x3f]  }
  0x35   : > { %v2340_v32 = vrot.slane %v1217_v47, 5  ;;  %v1665_v63 = vcombine.low %v2154_v52, %v2167_v58  ;;  %v1692_v39 = vcombine.low %v2091_v6, %v2097_v8  ;;  %v1705_v51 = vcombine.low %v2212_v54, %v2219_v37 }
  0x36   : > { %v903_v50 = vor.u32 %v902_v34, %v899_v31  ;;  %v1214_v13 = vor.u32 %v1213_v57, %v1210_v48  ;;  %v908_v0 = vrot.slane %v906_v56, 5  ;;  %v1132_v9 = vsel %vm469_vm0, %v1953_v24, 0 }
  0x37   : > { %v1693_v8 = vcombine.low %v2111_v21, %v2124_v33  ;;  %v1694_v54 = vcombine.low %v2137_v42, %v2154_v52  ;;  %v1042_v37 = vsel %vm469_vm0, %v1951_v45, 0  ;;  %v1695_v21 = vcombine.low %v2167_v58, %v2276_v17 }
  0x38   : > { %v1215_v60 = vrot.slane %v1214_v13, 4  ;;  %v904_v46 = vrot.slane %v903_v50, 4  ;;  %v1715_v28 = vcombine.low %v2239_v2, %v2243_v5  ;;  %v1329_v33 = vsel %vm469_vm0, %v1957_v20, 0 }
  0x39   : > { %1810 = vmatmul.mubr.msk.bf16.vlgmr.msra.gmra.mxu1 %vm456_vm3, %v1663_v55  ;;  %1824 = vmatmul.mubr.msk.bf16.gmra.mxu0 %vm456_vm3, %v2321_v29  ;;  %v1716_v42 = vcombine.low %v2253_v10, %v2257_v53  ;;  %v1726_v52 = vcombine.low %v2276_v17, %v2324_v30  ;;  %v1717_v58 = vcombine.low %v2273_v16, %v2300_v61  ;;  %v1712_v2 = vrot.slane %v2276_v17, 9 }
  0x3a   : > { %1828 = vmatpush3.bf16.msra.mxu1 %v821_v44  ;;  %1813 = vmatprep.mubr.msk.bf16.mxu1 %vm456_vm3, %v1664_v27  ;;  %v1220_v1 = vsel %vm2116_vm4, %v1215_v60, %v2340_v32  ;;  %v909_v6 = vsel %vm2116_vm4, %v904_v46, %v908_v0  ;;  %v1014_v5 = vrot.slane %v316_v7, 5  ;;  %v1740_v15 = vrot.slane %v2324_v30, 9 }
  0x3b   : > { %1839 = vmatprep.mubr.msk.bf16.mxu0 %vm456_vm3, %v1703_v43  ;;  %1895 = vmatprep.subr.msk.bf16.mxu1 %vm469_vm0, %v1951_v45  ;;  %v1706_v40 = vcombine.low %v2248_v3, %v909_v6  ;;  %v1235_v3 = vsel %vm469_vm0, %v1956_v12, 0  ;;  %v1313_v16 = vrot.slane %v2313_v4, 5  ;;  %v1734_v19 = vcombine.low %v909_v6, %v1220_v1 }
  0x3c   : > { %v1015_v10 = vsel %vm2206_vm7, %v1712_v2, %v1014_v5 }
  0x3d   : > { %v1718_v53 = vcombine.low %v2304_v25, %v1015_v10 }
  0x41   : > { %1814 = vmatmul.mubr.msk.bf16.gmra.mxu1 %vm456_vm3, %v1665_v63  ;;  %1840 = vmatmul.mubr.msk.bf16.vlgmr.msra.gmra.mxu0 %vm456_vm3, %v1704_v62 }
  0x42   : > { %1829 = vmatprep.mubr.msk.bf16.mxu1 %vm456_vm3, %v1692_v39  ;;  %1858 = vmatpush3.bf16.msra.mxu0 %v1132_v9 }
  0x43   : > { %1843 = vmatprep.mubr.msk.bf16.mxu0 %vm456_vm3, %v1705_v51  ;;  %1898 = vmatprep.subr.msk.bf16.mxu0 %vm469_vm0, %v1957_v20 }
  0x49   : > { %1830 = vmatmul.mubr.msk.bf16.vlgmr.msra.gmra.mxu1 %vm456_vm3, %v1693_v8  ;;  %1844 = vmatmul.mubr.msk.bf16.gmra.mxu0 %vm456_vm3, %v1706_v40 }
  0x4a   : > { %1848 = vmatpush3.bf16.msra.mxu1 %v1042_v37  ;;  %1833 = vmatprep.mubr.msk.bf16.mxu1 %vm456_vm3, %v1694_v54 }
  0x4b   : > { %1859 = vmatprep.mubr.msk.bf16.mxu0 %vm456_vm3, %v1663_v55  ;;  %1897 = vmatprep.subr.msk.bf16.mxu1 %vm469_vm0, %v1956_v12 }
  0x51   : > { %1834 = vmatmul.mubr.msk.bf16.gmra.mxu1 %vm456_vm3, %v1695_v21  ;;  %1860 = vmatmul.mubr.msk.bf16.vlgmr.msra.gmra.mxu0 %vm456_vm3, %v1664_v27 }
  0x52   : > { %1849 = vmatprep.mubr.msk.bf16.mxu1 %vm456_vm3, %v1715_v28  ;;  %1878 = vmatpush3.bf16.msra.mxu0 %v1329_v33 }
  0x53   : > { %1863 = vmatprep.mubr.msk.bf16.mxu0 %vm456_vm3, %v1665_v63 }
  0x59   : > { %1850 = vmatmul.mubr.msk.bf16.vlgmr.msra.gmra.mxu1 %vm456_vm3, %v1716_v42  ;;  %1864 = vmatmul.mubr.msk.bf16.gmra.mxu0 %vm456_vm3, %v1726_v52 }
  0x5a   : > { %1868 = vmatpush3.bf16.msra.mxu1 %v1235_v3  ;;  %1853 = vmatprep.mubr.msk.bf16.mxu1 %vm456_vm3, %v1717_v58 }
  0x5b   : > { %1879 = vmatprep.mubr.msk.bf16.mxu0 %vm456_vm3, %v2268_v14  ;;  %v1314_v14 = vsel %vm2206_vm7, %v1740_v15, %v1313_v16 }
  0x5c   : > { %v1743_v17 = vcombine.low %v1015_v10, %v1314_v14 }
  0x61   : > { %1854 = vmatmul.mubr.msk.bf16.gmra.mxu1 %vm456_vm3, %v1718_v53  ;;  %1880 = vmatmul.mubr.msk.bf16.vlgmr.msra.gmra.mxu0 %vm456_vm3, %v2281_v18 }
  0x62   : > { %1869 = vmatprep.mubr.msk.bf16.mxu1 %vm456_vm3, %v2190_v35  ;;  %1883 = vmatprep.mubr.msk.bf16.mxu0 %vm456_vm3, %v2321_v29 }
  0x69   : > { %1870 = vmatmul.mubr.msk.bf16.vlgmr.msra.gmra.mxu1 %vm456_vm3, %v2223_v59  ;;  %1884 = vmatmul.mubr.msk.bf16.gmra.mxu0 %vm456_vm3, %v1743_v17 }
  0x6a   : > { %1873 = vmatprep.mubr.msk.bf16.mxu1 %vm456_vm3, %v2261_v11 }
  0x71   : > { %1874 = vmatmul.mubr.msk.bf16.gmra.mxu1 %vm456_vm3, %v1734_v19 }
  0xe9   : > { %v1801_v18 = vpop.f32.mrf.mxu0 }
  0xeb   : > { %v507_v35 = vpop.f32.mrf.mxu0 }
  0xed   : > { %v1802_v22 = vpop.f32.mrf.mxu0 }
  0xef   : > { %v510_v23 = vpop.f32.mrf.mxu0 }
  0xf1   : > { %v1805_v24 = vpop.f32.mrf.mxu1  ;;  %v1821_v61 = vpop.f32.mrf.mxu0 }
  0xf3   : > { %v523_v49 = vpop.f32.mrf.mxu1  ;;  %v755_v25 = vpop.f32.mrf.mxu0 }
  0xf5   : > { %v2422_v26 = vpop.f32.mrf.mxu1  ;;  %v1822_v38 = vpop.f32.mrf.mxu0 }
  0xf7   : > { %v2424_v59 = vpop.f32.mrf.mxu1  ;;  %v758_v4 = vpop.f32.mrf.mxu0 }
  0xf9   : > { %v1811_v55 = vpop.f32.mrf.mxu1  ;;  %v1825_v27 = vpop.f32.mrf.mxu0 }
  0xfa   : > { %v621_v40 = vadd.f32 %v1811_v55, %v1801_v18 }
  0xfb   : > { %v612_v11 = vpop.f32.mrf.mxu1  ;;  %v771_v29 = vpop.f32.mrf.mxu0 }
  0xfc   : > { %v613_v12 = vadd.f32 %v612_v11, %v507_v35  ;;  %v788_v33 = vadd.f32 %v1821_v61, %v621_v40 }
  0xfd   : > { %v1812_v30 = vpop.f32.mrf.mxu1  ;;  %v2426_v31 = vpop.f32.mrf.mxu0 }
  0xfe   : > { %v624_v42 = vadd.f32 %v1812_v30, %v1802_v22  ;;  %v786_v5 = vadd.f32 %v755_v25, %v613_v12 }
  0xff   : > { %v615_v34 = vpop.f32.mrf.mxu1  ;;  %v2428_v36 = vpop.f32.mrf.mxu0 }
 0x100   : > { %v616_v52 = vadd.f32 %v615_v34, %v510_v23  ;;  %v789_v15 = vadd.f32 %v1822_v38, %v624_v42 }
 0x101   : > { %v1815_v41 = vpop.f32.mrf.mxu1  ;;  %v1841_v43 = vpop.f32.mrf.mxu0 }
 0x102   : > { %v637_v16 = vadd.f32 %v1815_v41, %v1805_v24  ;;  %v787_v17 = vadd.f32 %v758_v4, %v616_v52 }
 0x103   : > { %v628_v44 = vpop.f32.mrf.mxu1  ;;  %v972_v45 = vpop.f32.mrf.mxu0 }
 0x104   : > { %v629_v19 = vadd.f32 %v628_v44, %v523_v49  ;;  %v792_v30 = vadd.f32 %v1825_v27, %v637_v16 }
 0x105   : > { %v1816_v7 = vpop.f32.mrf.mxu1  ;;  %v1842_v47 = vpop.f32.mrf.mxu0 }
 0x106   : > { %v640_v38 = vadd.f32 %v1816_v7, %v2422_v26 }
 0x107   : > { %v631_v48 = vpop.f32.mrf.mxu1  ;;  %v975_v57 = vpop.f32.mrf.mxu0 }
 0x108   : > { %v632_v44 = vadd.f32 %v631_v48, %v2424_v59 }
 0x109   : > { %v1831_v50 = vpop.f32.mrf.mxu1  ;;  %v2430_v56 = vpop.f32.mrf.mxu0 }
 0x10a   : > { %v890_v3 = vadd.f32 %v1831_v50, %v788_v33  ;;  %v790_v50 = vadd.f32 %v771_v29, %v629_v19 }
 0x10b   : > { %v857_v13 = vpop.f32.mrf.mxu1  ;;  %v2432_v32 = vpop.f32.mrf.mxu0 }
 0x10c   : > { %v888_v14 = vadd.f32 %v857_v13, %v786_v5  ;;  %v1005_v61 = vadd.f32 %v1841_v43, %v890_v3 }
 0x10d   : > { %v1832_v60 = vpop.f32.mrf.mxu1  ;;  %v2434_v62 = vpop.f32.mrf.mxu0 }
 0x10e   : > { %v891_v22 = vadd.f32 %v1832_v60, %v789_v15  ;;  %v1003_v25 = vadd.f32 %v972_v45, %v888_v14  ;;  %v793_v45 = vadd.f32 %v2426_v31, %v640_v38 }
 0x10f   : > { %v860_v63 = vpop.f32.mrf.mxu1  ;;  %v2436_v39 = vpop.f32.mrf.mxu0 }
 0x110   : > { %v889_v23 = vadd.f32 %v860_v63, %v787_v17  ;;  %v1006_v24 = vadd.f32 %v1842_v47, %v891_v22 }
 0x111   : > { %v1835_v46 = vpop.f32.mrf.mxu1  ;;  %v1861_v0 = vpop.f32.mrf.mxu0 }
 0x112   : > { %v894_v41 = vadd.f32 %v1835_v46, %v792_v30  ;;  %v1004_v43 = vadd.f32 %v975_v57, %v889_v23  ;;  %v791_v46 = vadd.f32 %v2428_v36, %v632_v44  ;;  %v2461_v57 = vld [vmem:[%s2517_s2] ss:$0 sm:$0xff] }
 0x113   : > { %v873_v1 = vpop.f32.mrf.mxu1  ;;  %v1168_v51 = vpop.f32.mrf.mxu0 }
 0x114   : > { %v892_v13 = vadd.f32 %v873_v1, %v790_v50  ;;  %v1009_v29 = vadd.f32 %v2430_v56, %v894_v41 }
 0x115   : > { %v1836_v9 = vpop.f32.mrf.mxu1  ;;  %v1862_v20 = vpop.f32.mrf.mxu0 }
 0x116   : > { %v1007_v59 = vadd.f32 %v2432_v32, %v892_v13  ;;  %v895_v48 = vadd.f32 %v1836_v9, %v793_v45 }
 0x117   : > { %v2438_v6 = vpop.f32.mrf.mxu1  ;;  %v2440_v8 = vpop.f32.mrf.mxu0 }
 0x118   : > { %v893_v56 = vadd.f32 %v2438_v6, %v791_v46 }
 0x119   : > { %v1851_v54 = vpop.f32.mrf.mxu1  ;;  %v2442_v37 = vpop.f32.mrf.mxu0 }
 0x11a   : > { %v1111_v34 = vadd.f32 %v1851_v54, %v1005_v61  ;;  %v1008_v15 = vadd.f32 %v2436_v39, %v893_v56 }
 0x11b   : > { %v1078_v21 = vpop.f32.mrf.mxu1  ;;  %v2444_v28 = vpop.f32.mrf.mxu0 }
 0x11c   : > { %v1109_v4 = vadd.f32 %v1078_v21, %v1003_v25  ;;  %v1201_v63 = vadd.f32 %v1861_v0, %v1111_v34 }
 0x11d   : > { %v1852_v58 = vpop.f32.mrf.mxu1  ;;  %v2446_v2 = vpop.f32.mrf.mxu0 }
 0x11e   : > { %v1112_v27 = vadd.f32 %v1852_v58, %v1006_v24  ;;  %v1199_v26 = vadd.f32 %v1168_v51, %v1109_v4  ;;  %v1010_v58 = vadd.f32 %v2434_v62, %v895_v48 }
 0x11f   : > { %v1081_v10 = vpop.f32.mrf.mxu1  ;;  %v2448_v53 = vpop.f32.mrf.mxu0 }
 0x120   : > { %v1110_v54 = vadd.f32 %v1081_v10, %v1004_v43  ;;  %v1202_v31 = vadd.f32 %v1862_v20, %v1112_v27 }
 0x121   : > { %v1855_v18 = vpop.f32.mrf.mxu1  ;;  %v1881_v35 = vpop.f32.mrf.mxu0 }
 0x122   : > { %v1115_v1 = vadd.f32 %v1855_v18, %v1009_v29  ;;  %v1200_v51 = vadd.f32 %v2440_v8, %v1110_v54 }
 0x123   : > { %v1094_v55 = vpop.f32.mrf.mxu1  ;;  %v1365_v11 = vpop.f32.mrf.mxu0 }
 0x124   : > { %v1113_v32 = vadd.f32 %v1094_v55, %v1007_v59  ;;  %v1205_v6 = vadd.f32 %v2442_v37, %v1115_v1 }
 0x125   : > { %v1856_v40 = vpop.f32.mrf.mxu1  ;;  %v1882_v49 = vpop.f32.mrf.mxu0 }
 0x126   : > { %v1116_v16 = vadd.f32 %v1856_v40, %v1010_v58  ;;  %v1203_v17 = vadd.f32 %v2444_v28, %v1113_v32 }
 0x127   : > { %v1097_v60 = vpop.f32.mrf.mxu1  ;;  %v1368_v47 = vpop.f32.mrf.mxu0 }
 0x128   : > { %v1114_v37 = vadd.f32 %v1097_v60, %v1008_v15  ;;  %v1206_v39 = vadd.f32 %v2446_v2, %v1116_v16 }
 0x129   : > { %v1871_v12 = vpop.f32.mrf.mxu1  ;;  %v1885_v52 = vpop.f32.mrf.mxu0 }
 0x12a   : > { %v1304_v7 = vadd.f32 %v1871_v12, %v1201_v63  ;;  %v1204_v40 = vadd.f32 %v2448_v53, %v1114_v37 }
 0x12b   : > { %v1271_v0 = vpop.f32.mrf.mxu1 }
 0x12c   : > { %v1398_v21 = vadd.f32 %v1881_v35, %v1304_v7  ;;  %v1302_v33 = vadd.f32 %v1271_v0, %v1199_v26  ;;  %v1381_v35 = vpop.f32.mrf.mxu0 }
 0x12d   : > { %v1872_v36 = vpop.f32.mrf.mxu1 }
 0x12e   : > { %v1413_v9 = vadd.f32 %v2461_v57, %v1398_v21  ;;  %v1396_v42 = vadd.f32 %v1365_v11, %v1302_v33  ;;  %v1305_v20 = vadd.f32 %v1872_v36, %v1202_v31  ;;  %v1886_v38 = vpop.f32.mrf.mxu0 }
 0x12f   : > { %v1274_v5 = vpop.f32.mrf.mxu1 }
 0x130   : > { %1421 = vst [vmem:[%s2468_s15 + $0x10] sm:$0xff] %v1413_v9  ;;  %v1411_v8 = vadd.f32 %v2461_v57, %v1396_v42  ;;  %v1399_v3 = vadd.f32 %v1882_v49, %v1305_v20  ;;  %v1303_v10 = vadd.f32 %v1274_v5, %v1200_v51  ;;  %v1443_v4 = vmul.f32 %v1413_v9, %v1413_v9  ;;  %v1384_v45 = vpop.f32.mrf.mxu0 }
 0x131   : > { %v1875_v14 = vpop.f32.mrf.mxu1 }
 0x132   : > { %1419 = vst [vmem:[%s2468_s15] sm:$0xff] %v1411_v8  ;;  %v1414_v19 = vadd.f32 %v2461_v57, %v1399_v3  ;;  %v1397_v62 = vadd.f32 %v1368_v47, %v1303_v10  ;;  %v1308_v18 = vadd.f32 %v1875_v14, %v1205_v6  ;;  %v1441_v11 = vmul.f32 %v1411_v8, %v1411_v8 }
 0x133   : > { %v1287_v61 = vpop.f32.mrf.mxu1 }
 0x134   : > { %1422 = vst [vmem:[%s2468_s15 + $0x18] sm:$0xff] %v1414_v19  ;;  %v1412_v22 = vadd.f32 %v2461_v57, %v1397_v62  ;;  %v1402_v23 = vadd.f32 %v1885_v52, %v1308_v18  ;;  %v1306_v55 = vadd.f32 %v1287_v61, %v1203_v17  ;;  %v1444_v60 = vmul.f32 %v1414_v19, %v1414_v19 }
 0x135   : > { %v1876_v30 = vpop.f32.mrf.mxu1 }
 0x136   : > { %1420 = vst [vmem:[%s2468_s15 + $0x8] sm:$0xff] %v1412_v22  ;;  %v1427_v28 = vadd.f32 %v1412_v22, %v1411_v8  ;;  %v1442_v25 = vmul.f32 %v1412_v22, %v1412_v22  ;;  %v1417_v34 = vadd.f32 %v2461_v57, %v1402_v23  ;;  %v1400_v50 = vadd.f32 %v1381_v35, %v1306_v55 }
 0x137   : > { %v1309_v24 = vadd.f32 %v1876_v30, %v1206_v39  ;;  %v1290_v41 = vpop.f32.mrf.mxu1 }
 0x138   : > { %v1428_v49 = vadd.f32 %v1427_v28, %v1413_v9  ;;  %v1449_v44 = vadd.f32 %v1442_v25, %v1441_v11  ;;  %1425 = vst [vmem:[%s2468_s15 + $0x30] sm:$0xff] %v1417_v34  ;;  %v1415_v2 = vadd.f32 %v2461_v57, %v1400_v50  ;;  %v1307_v13 = vadd.f32 %v1290_v41, %v1204_v40 }
 0x139   : > { %v1403_v43 = vadd.f32 %v1886_v38, %v1309_v24  ;;  %v1447_v48 = vmul.f32 %v1417_v34, %v1417_v34 }
 0x13a   : > { %v1450_v63 = vadd.f32 %v1449_v44, %v1443_v4  ;;  %1423 = vst [vmem:[%s2468_s15 + $0x20] sm:$0xff] %v1415_v2  ;;  %v1429_v27 = vadd.f32 %v1428_v49, %v1414_v19  ;;  %v1401_v53 = vadd.f32 %v1384_v45, %v1307_v13  ;;  %v1445_v29 = vmul.f32 %v1415_v2, %v1415_v2 }
 0x13b   : > { %v1418_v54 = vadd.f32 %v2461_v57, %v1403_v43 }
 0x13c   : > { %v1430_v12 = vadd.f32 %v1429_v27, %v1415_v2  ;;  %v1451_v26 = vadd.f32 %v1450_v63, %v1444_v60  ;;  %v1416_v7 = vadd.f32 %v2461_v57, %v1401_v53 }
 0x13d   : > { %1426 = vst [vmem:[%s2468_s15 + $0x38] sm:$0xff] %v1418_v54  ;;  %v1448_v1 = vmul.f32 %v1418_v54, %v1418_v54 }
 0x13e   : > { %v1452_v47 = vadd.f32 %v1451_v26, %v1445_v29  ;;  %1424 = vst [vmem:[%s2468_s15 + $0x28] sm:$0xff] %v1416_v7  ;;  %v1431_v46 = vadd.f32 %v1430_v12, %v1416_v7  ;;  %v1446_v59 = vmul.f32 %v1416_v7, %v1416_v7 }
 0x140   : > { %v1432_v0 = vadd.f32 %v1431_v46, %v1417_v34  ;;  %v1453_v31 = vadd.f32 %v1452_v47, %v1446_v59 }
 0x142   : > { %v1433_v21 = vadd.f32 %v1432_v0, %v1418_v54  ;;  %v1454_v33 = vadd.f32 %v1453_v31, %v1447_v48 }
 0x144   : > { %v1434_v56 = vrot.slane %v1433_v21, 4  ;;  %v1455_v51 = vadd.f32 %v1454_v33, %v1448_v1 }
 0x146   : > { %v1435_v36 = vadd.f32 %v1434_v56, %v1433_v21  ;;  %v1456_v32 = vrot.slane %v1455_v51, 4 }
 0x148   : > { %v1436_v9 = vrot.slane %v1435_v36, 2  ;;  %v1457_v42 = vadd.f32 %v1456_v32, %v1455_v51 }
 0x14a   : > { %v1437_v57 = vadd.f32 %v1436_v9, %v1435_v36  ;;  %v1458_v20 = vrot.slane %v1457_v42, 2 }
 0x14c   : > { %v1438_v52 = vrot.slane %v1437_v57, 1  ;;  %v1459_v58 = vadd.f32 %v1458_v20, %v1457_v42 }
 0x14e   : > { %v1439_v5 = vadd.f32 %v1438_v52, %v1437_v57  ;;  %v1460_v6 = vrot.slane %v1459_v58, 1 }
 0x150   : > { %1440 = vst [vmem:[%s290_s27] sm:$0x1] %v1439_v5  ;;  %v1461_v8 = vadd.f32 %v1460_v6, %v1459_v58 }
 0x152   : > { %1462 = vst [vmem:[%s297_s30] sm:$0x1] %v1461_v8 }
 0x153 PF: > { %s16_s22 = sadd.s32 1, %s1997_s22   ;;  %s2525_s18 = smov %s1989_s20 }
 0x154   : > { %p13_p7 = scmp.ge.s32.totalorder %s16_s22, 18   ;;  %s2526_s19 = smov %s1993_s21 }
 0x155   : > { %s2527_s20 = smov %s2530_s23  ;;  %s2528_s21 = smov %s2534_s24 }
 0x156   :  { %15 = sbr.rel (!%p13_p7) target bundleno = 3 (0x3), region = 94 }

</bundles_post_ra>
